<compile_context>
chip_gen: v5e
topology: v5e:2x2
jax: 0.10.0
libtpu: 0.0.40
codegen_flags: <defaults>
</compile_context>

<pallas_src>
import jax
import jax.numpy as jnp
from jax.experimental import pallas as pl
from jax.experimental.pallas import tpu as pltpu


# --------------------------------------------------------------------------- #
# Kernels
# --------------------------------------------------------------------------- #
def _downsample_kernel_im2col(e0_ref, e1_ref, e2_ref, o0_ref, o1_ref, o2_ref,
                              w_ref, b_ref, out_ref, slab_ref):
    """Lane-aligned path (C % 128 == 0): one fused (TM*Wo, 9C) x (9C, TN) matmul.

    e{kh}_ref: (TM, Wo+1, C)  even-column phase, row tap kh  (x_pad[2i+kh, 2u])
    o{kh}_ref: (TM, Wo,   C)  odd-column  phase, row tap kh  (x_pad[2i+kh, 2u+1])
    w_ref:     (9*C, TN)      weight slice, rows ordered (kh, kw, C_in)
    b_ref:     (1, TN)        bias slice
    out_ref:   (TN, TM*Wo)    NCHW output tile (flattened pixels on the lane dim)
    slab_ref:  (TM, Wo, 9*C)  persistent VMEM im2col slab (native input dtype)
    """
    TN, P = out_ref.shape
    TM, Wo, C9 = slab_ref.shape
    C = C9 // 9

    # Assemble the im2col slab once per (batch, row-tile); it is reused by every
    # C_out step (innermost grid axis).
    @pl.when(pl.program_id(2) == 0)
    def _assemble():
        e_refs = (e0_ref, e1_ref, e2_ref)
        o_refs = (o0_ref, o1_ref, o2_ref)
        for kh in range(3):
            base = 3 * kh * C
            # Every tap is a contiguous static slice of a dense polyphase slab;
            # slice the refs directly (no full (TM, Wo+1, C) vreg materialisation).
            slab_ref[:, :, base:base + C] = e_refs[kh][:, 0:Wo, :]                  # (kh, 0)
            slab_ref[:, :, base + C:base + 2 * C] = o_refs[kh][...]                 # (kh, 1)
            slab_ref[:, :, base + 2 * C:base + 3 * C] = e_refs[kh][:, 1:Wo + 1, :]  # (kh, 2)

    # Single MXU contraction with f32 accumulation, operands in native dtype.
    lhs = slab_ref[...].reshape(TM * Wo, 9 * C)
    acc = jnp.dot(lhs, w_ref[...], preferred_element_type=jnp.float32)   # (P, TN)
    acc = acc + b_ref[...].astype(jnp.float32)
    # One XLU transpose so the store is directly NCHW(-flattened): removes the
    # wrapper-side output transpose (a full extra HBM read+write pass).
    out_ref[...] = acc.T.astype(out_ref.dtype)                           # (TN, P)


def _downsample_kernel_direct(e0_ref, e1_ref, e2_ref, o0_ref, o1_ref, o2_ref,
                              w_ref, b_ref, out_ref):
    """Narrow / non-lane-aligned C: 9 accumulating K=C matmuls, no im2col slab.

    out_ref: (TM, Wo, C)  NHWC tile (small tensors; wrapper does the final NCHW).
    """
    TM, Wo, C = out_ref.shape
    e_refs = (e0_ref, e1_ref, e2_ref)
    o_refs = (o0_ref, o1_ref, o2_ref)

    acc = jnp.zeros((TM * Wo, C), jnp.float32)
    for kh in range(3):
        taps = (e_refs[kh][:, 0:Wo, :],         # (kh, 0)
                o_refs[kh][...],                # (kh, 1)
                e_refs[kh][:, 1:Wo + 1, :])     # (kh, 2)
        for kw in range(3):
            k = 3 * kh + kw
            lhs = taps[kw].reshape(TM * Wo, C)
            acc = acc + jnp.dot(lhs, w_ref[k * C:(k + 1) * C, :],
                                preferred_element_type=jnp.float32)
    acc = acc + b_ref[...].astype(jnp.float32)
    out_ref[...] = acc.reshape(TM, Wo, C).astype(out_ref.dtype)


# --------------------------------------------------------------------------- #
# Tiling heuristic
# --------------------------------------------------------------------------- #
def _pick_tile_rows(Ho, Wo, C, itemsize, n_batch, vmem_cap, flat_out):
    # Target ~2048 output pixels per matmul (amortise ~0.35us/step, keep DMA
    # efficiency); cap the largest per-step buffer (the im2col slab) at a
    # fraction of this chip's VMEM so everything double-buffers comfortably.
    target_px = 2048
    slab_cap = max(1 << 20, vmem_cap // 8)
    tm = max(1, target_px // max(1, Wo))
    tm = min(tm, max(1, slab_cap // max(1, Wo * 9 * C * itemsize)))
    tm = min(tm, Ho)
    if n_batch == 1 and Ho >= 2:
        # Prefer >= 2 grid steps so both TensorCores are used on v7x.
        tm = min(tm, max(1, Ho // 2))

    def ok(t):
        if Ho % t:
            return False
        if not (t % 8 == 0 or t == Ho):              # sublane-aligned output block
            return False
        if flat_out and not ((t * Wo) % 128 == 0 or t == Ho):  # lane-dense NCHW store
            return False
        return True

    cands = [t for t in range(tm, 0, -1) if ok(t)]
    return cands[0] if cands else Ho


# --------------------------------------------------------------------------- #
# Wrapper
# --------------------------------------------------------------------------- #
def downsample_pallas(x_nchw, weight, bias, *, tile_rows=None):
    """Stride-2 3x3 conv with padding=1 (C_in == C_out).

    Args:
      x_nchw: (N, C, H, W); H and W must be even.
      weight: (3, 3, C, C) laid out (kh, kw, C_in, C_out).
      bias:   (C,)
    Returns:
      (N, C, H // 2, W // 2)
    """
    N, C, H, W = x_nchw.shape
    if H % 2 == 1:
        raise ValueError("downsampling tensor height should be even")
    if W % 2 == 1:
        raise ValueError("downsampling tensor width should be even")
    Ho, Wo = H // 2, W // 2

    # --- single relayout pass: NCHW -> NHWC, conv zero-pad, polyphase split --- #
    x_nhwc = jnp.transpose(x_nchw, (0, 2, 3, 1))
    x_pad = jnp.pad(x_nhwc, ((0, 0), (1, 1), (1, 1), (0, 0)))      # (N, H+2, W+2, C)
    evens, odds = [], []
    for kh in range(3):
        rows = x_pad[:, kh:kh + 2 * Ho:2]                          # (N, Ho, W+2, C)
        evens.append(rows[:, :, 0:2 * Wo + 1:2, :])                # (N, Ho, Wo+1, C)
        odds.append(rows[:, :, 1:2 * Wo:2, :])                     # (N, Ho, Wo,   C)

    w_flat = weight.reshape(9 * C, C)      # rows ordered (kh, kw, C_in): lane-dense
    bias2d = bias.reshape(1, C)

    itemsize = jnp.dtype(x_nchw.dtype).itemsize
    try:
        vmem_cap = int(pltpu.get_tpu_info().vmem_capacity_bytes)
    except Exception:                       # pragma: no cover
        vmem_cap = 64 * 1024 * 1024         # conservative (v7x-sized) default
    vmem_limit = int(max(32 * 1024 * 1024,
                         min(0.75 * vmem_cap, 100 * 1024 * 1024)))

    use_im2col = (C % 128 == 0)
    # C_out tiling bounds the resident weight + output blocks on v7x (64 MiB VMEM);
    # innermost grid axis so the input slabs are not re-DMAed per C_out step.
    TN = 256 if (use_im2col and C > 256 and C % 256 == 0) else C
    CN = C // TN

    if tile_rows is None:
        tile_rows = _pick_tile_rows(Ho, Wo, C, itemsize, N, vmem_cap, use_im2col)
    TM = tile_rows
    if Ho % TM:
        raise ValueError("tile_rows must divide H // 2")
    R = Ho // TM

    def img_map(n, r, cn):
        return (n, r, 0, 0)

    img_specs = ([pl.BlockSpec((None, TM, Wo + 1, C), img_map)] * 3 +
                 [pl.BlockSpec((None, TM, Wo, C), img_map)] * 3)

    def run(single_buffer_resident):
        # Resident weight / bias: constant index map over (n, r); single-buffer
        # them when the block never changes (halves weight VMEM residency).
        resident_kw = ({"pipeline_mode": pl.Buffered(1)}
                       if (single_buffer_resident and CN == 1) else {})
        w_spec = pl.BlockSpec((9 * C, TN), lambda n, r, cn: (0, cn), **resident_kw)
        b_spec = pl.BlockSpec((1, TN), lambda n, r, cn: (0, cn), **resident_kw)

        if use_im2col:
            kernel = _downsample_kernel_im2col
            # NCHW output with the (Ho, Wo) dims flattened so the kernel's store
            # is lane-dense; the wrapper reshape back to 4D is free (contiguous).
            out_shape = jax.ShapeDtypeStruct((N, C, Ho * Wo), x_nchw.dtype)
            out_spec = pl.BlockSpec((None, TN, TM * Wo), lambda n, r, cn: (n, cn, r))
            scratch = [pltpu.VMEM((TM, Wo, 9 * C), x_nchw.dtype)]
        else:
            kernel = _downsample_kernel_direct
            out_shape = jax.ShapeDtypeStruct((N, Ho, Wo, C), x_nchw.dtype)
            out_spec = pl.BlockSpec((None, TM, Wo, C), img_map)
            scratch = []

        return pl.pallas_call(
            kernel,
            out_shape=out_shape,
            grid_spec=pltpu.PrefetchScalarGridSpec(
                num_scalar_prefetch=0,
                grid=(N, R, CN),
                in_specs=img_specs + [w_spec, b_spec],
                out_specs=out_spec,
                scratch_shapes=scratch,
            ),
            compiler_params=pltpu.CompilerParams(
                dimension_semantics=("parallel", "parallel", "arbitrary"),
                vmem_limit_bytes=vmem_limit,
                # Let XLA fuse the relayout (transpose/pad/polyphase slices) into
                # the slab operands instead of materialising six HBM arrays.
                allow_input_fusion=[True] * 6 + [False, False],
            ),
        )(*evens, *odds, w_flat, bias2d)

    try:
        out = run(single_buffer_resident=True)
    except Exception:
        # pipeline_mode=pl.Buffered(1) is not available on every jax version;
        # fall back to the default double-buffered resident weight / bias.
        out = run(single_buffer_resident=False)

    if use_im2col:
        return out.reshape(N, C, Ho, Wo)          # free: merges contiguous dims
    # Narrow-C fallback emits NHWC (tiny tensors); finish the layout here.
    return jnp.transpose(out, (0, 3, 1, 2))


# --------------------------------------------------------------------------- #
# Reference + self-test
# --------------------------------------------------------------------------- #
def _reference_conv(x_nchw, weight, bias):
    w_oihw = jnp.transpose(weight, (3, 2, 0, 1))  # (C_out, C_in, kh, kw)
    y = jax.lax.conv_general_dilated(
        x_nchw.astype(jnp.float32),
        w_oihw.astype(jnp.float32),
        window_strides=(2, 2),
        padding=((1, 1), (1, 1)),
        dimension_numbers=("NCHW", "OIHW", "NCHW"),
        precision=jax.lax.Precision.HIGHEST,
    )
    return y + bias.reshape(1, -1, 1, 1)


if __name__ == "__main__":
    key = jax.random.PRNGKey(0)

    def check(N, C, H, W):
        kx, kw, kb = jax.random.split(jax.random.fold_in(key, C * H + W), 3)
        x = jax.random.normal(kx, (N, C, H, W), dtype=jnp.float32)
        weight = jax.random.normal(kw, (3, 3, C, C), dtype=jnp.float32) * 0.1
        bias = jax.random.normal(kb, (C,), dtype=jnp.float32) * 0.1

        out = jax.block_until_ready(downsample_pallas(x, weight, bias))
        assert out.shape == (N, C, H // 2, W // 2), out.shape

        ref = _reference_conv(x, weight, bias)
        err = float(jnp.max(jnp.abs(out - ref)))
        assert jnp.allclose(out, ref, atol=2e-3, rtol=2e-3), err

    # Narrow-C path (direct 9-matmul kernel; exercises the v5e-friendly fallback).
    check(2, 4, 16, 16)
    # Lane-aligned path (im2col slab, single fused matmul, NCHW store from kernel).
    check(2, 128, 32, 32)

    print("KERNEL_OK")
</pallas_src>

<mosaic_0001>
module attributes {stable_mosaic.version = 11 : i64} {
  func.func @_downsample_kernel_direct(%arg0: i32, %arg1: i32, %arg2: i32, %arg3: memref<1x8x9x4xf32, #tpu.memory_space<vmem>>, %arg4: memref<1x8x9x4xf32, #tpu.memory_space<vmem>>, %arg5: memref<1x8x9x4xf32, #tpu.memory_space<vmem>>, %arg6: memref<1x8x8x4xf32, #tpu.memory_space<vmem>>, %arg7: memref<1x8x8x4xf32, #tpu.memory_space<vmem>>, %arg8: memref<1x8x8x4xf32, #tpu.memory_space<vmem>>, %arg9: memref<36x4xf32, #tpu.memory_space<vmem>>, %arg10: memref<1x4xf32, #tpu.memory_space<vmem>>, %arg11: memref<1x8x8x4xf32, #tpu.memory_space<vmem>>) attributes {dimension_semantics = [#tpu.dimension_semantics<parallel>, #tpu.dimension_semantics<parallel>, #tpu.dimension_semantics<arbitrary>], iteration_bounds = array<i64: 2, 1, 1>, scalar_prefetch = 0 : i64, scratch_operands = 0 : i64, tpu.core_type = #tpu.core_type<tc>, window_params = [{transform_indices = @transform_0, window_bounds = array<i64: 1, 8, 9, 4>}, {transform_indices = @transform_1, window_bounds = array<i64: 1, 8, 9, 4>}, {transform_indices = @transform_2, window_bounds = array<i64: 1, 8, 9, 4>}, {transform_indices = @transform_3, window_bounds = array<i64: 1, 8, 8, 4>}, {transform_indices = @transform_4, window_bounds = array<i64: 1, 8, 8, 4>}, {transform_indices = @transform_5, window_bounds = array<i64: 1, 8, 8, 4>}, {pipeline_mode = #tpu.pipeline_mode<synchronous>, transform_indices = @transform_6, window_bounds = array<i64: 36, 4>}, {pipeline_mode = #tpu.pipeline_mode<synchronous>, transform_indices = @transform_7, window_bounds = array<i64: 1, 4>}, {transform_indices = @transform_8, window_bounds = array<i64: 1, 8, 8, 4>}]} {
    %cst = arith.constant 0.000000e+00 : f32
    %0 = vector.broadcast %cst : f32 to vector<64x4xf32>
    %c0 = arith.constant 0 : index
    %c0_0 = arith.constant 0 : index
    %c0_1 = arith.constant 0 : index
    %c0_2 = arith.constant 0 : index
    %1 = vector.load %arg3[%c0, %c0_0, %c0_1, %c0_2] : memref<1x8x9x4xf32, #tpu.memory_space<vmem>>, vector<1x8x8x4xf32>
    %2 = vector.shape_cast %1 : vector<1x8x8x4xf32> to vector<8x8x4xf32>
    %c0_3 = arith.constant 0 : index
    %c0_4 = arith.constant 0 : index
    %c0_5 = arith.constant 0 : index
    %c0_6 = arith.constant 0 : index
    %3 = vector.load %arg6[%c0_3, %c0_4, %c0_5, %c0_6] : memref<1x8x8x4xf32, #tpu.memory_space<vmem>>, vector<1x8x8x4xf32>
    %4 = vector.shape_cast %3 : vector<1x8x8x4xf32> to vector<8x8x4xf32>
    %c0_7 = arith.constant 0 : index
    %c0_8 = arith.constant 0 : index
    %c1 = arith.constant 1 : index
    %c0_9 = arith.constant 0 : index
    %5 = vector.load %arg3[%c0_7, %c0_8, %c1, %c0_9] : memref<1x8x9x4xf32, #tpu.memory_space<vmem>>, vector<1x8x8x4xf32>
    %6 = vector.shape_cast %5 : vector<1x8x8x4xf32> to vector<8x8x4xf32>
    %7 = vector.shape_cast %2 : vector<8x8x4xf32> to vector<64x4xf32>
    %c0_10 = arith.constant 0 : index
    %c0_11 = arith.constant 0 : index
    %8 = vector.load %arg9[%c0_10, %c0_11] : memref<36x4xf32, #tpu.memory_space<vmem>>, vector<4x4xf32>
    %cst_12 = arith.constant dense<0.000000e+00> : vector<64x4xf32>
    %9 = tpu.matmul %7, %8, %cst_12 {dimension_numbers = #tpu.dot_dimension_numbers<[1], [0], [0], [1], [0, 0, 1, 1], [], []>} : vector<64x4xf32>, vector<4x4xf32>, vector<64x4xf32> -> vector<64x4xf32>
    %10 = arith.addf %0, %9 : vector<64x4xf32>
    %11 = vector.shape_cast %4 : vector<8x8x4xf32> to vector<64x4xf32>
    %c4 = arith.constant 4 : index
    %c0_13 = arith.constant 0 : index
    %12 = vector.load %arg9[%c4, %c0_13] : memref<36x4xf32, #tpu.memory_space<vmem>>, vector<4x4xf32>
    %cst_14 = arith.constant dense<0.000000e+00> : vector<64x4xf32>
    %13 = tpu.matmul %11, %12, %cst_14 {dimension_numbers = #tpu.dot_dimension_numbers<[1], [0], [0], [1], [0, 0, 1, 1], [], []>} : vector<64x4xf32>, vector<4x4xf32>, vector<64x4xf32> -> vector<64x4xf32>
    %14 = arith.addf %10, %13 : vector<64x4xf32>
    %15 = vector.shape_cast %6 : vector<8x8x4xf32> to vector<64x4xf32>
    %c8 = arith.constant 8 : index
    %c0_15 = arith.constant 0 : index
    %16 = vector.load %arg9[%c8, %c0_15] : memref<36x4xf32, #tpu.memory_space<vmem>>, vector<4x4xf32>
    %cst_16 = arith.constant dense<0.000000e+00> : vector<64x4xf32>
    %17 = tpu.matmul %15, %16, %cst_16 {dimension_numbers = #tpu.dot_dimension_numbers<[1], [0], [0], [1], [0, 0, 1, 1], [], []>} : vector<64x4xf32>, vector<4x4xf32>, vector<64x4xf32> -> vector<64x4xf32>
    %18 = arith.addf %14, %17 : vector<64x4xf32>
    %c0_17 = arith.constant 0 : index
    %c0_18 = arith.constant 0 : index
    %c0_19 = arith.constant 0 : index
    %c0_20 = arith.constant 0 : index
    %19 = vector.load %arg4[%c0_17, %c0_18, %c0_19, %c0_20] : memref<1x8x9x4xf32, #tpu.memory_space<vmem>>, vector<1x8x8x4xf32>
    %20 = vector.shape_cast %19 : vector<1x8x8x4xf32> to vector<8x8x4xf32>
    %c0_21 = arith.constant 0 : index
    %c0_22 = arith.constant 0 : index
    %c0_23 = arith.constant 0 : index
    %c0_24 = arith.constant 0 : index
    %21 = vector.load %arg7[%c0_21, %c0_22, %c0_23, %c0_24] : memref<1x8x8x4xf32, #tpu.memory_space<vmem>>, vector<1x8x8x4xf32>
    %22 = vector.shape_cast %21 : vector<1x8x8x4xf32> to vector<8x8x4xf32>
    %c0_25 = arith.constant 0 : index
    %c0_26 = arith.constant 0 : index
    %c1_27 = arith.constant 1 : index
    %c0_28 = arith.constant 0 : index
    %23 = vector.load %arg4[%c0_25, %c0_26, %c1_27, %c0_28] : memref<1x8x9x4xf32, #tpu.memory_space<vmem>>, vector<1x8x8x4xf32>
    %24 = vector.shape_cast %23 : vector<1x8x8x4xf32> to vector<8x8x4xf32>
    %25 = vector.shape_cast %20 : vector<8x8x4xf32> to vector<64x4xf32>
    %c12 = arith.constant 12 : index
    %c0_29 = arith.constant 0 : index
    %26 = vector.load %arg9[%c12, %c0_29] : memref<36x4xf32, #tpu.memory_space<vmem>>, vector<4x4xf32>
    %cst_30 = arith.constant dense<0.000000e+00> : vector<64x4xf32>
    %27 = tpu.matmul %25, %26, %cst_30 {dimension_numbers = #tpu.dot_dimension_numbers<[1], [0], [0], [1], [0, 0, 1, 1], [], []>} : vector<64x4xf32>, vector<4x4xf32>, vector<64x4xf32> -> vector<64x4xf32>
    %28 = arith.addf %18, %27 : vector<64x4xf32>
    %29 = vector.shape_cast %22 : vector<8x8x4xf32> to vector<64x4xf32>
    %c16 = arith.constant 16 : index
    %c0_31 = arith.constant 0 : index
    %30 = vector.load %arg9[%c16, %c0_31] : memref<36x4xf32, #tpu.memory_space<vmem>>, vector<4x4xf32>
    %cst_32 = arith.constant dense<0.000000e+00> : vector<64x4xf32>
    %31 = tpu.matmul %29, %30, %cst_32 {dimension_numbers = #tpu.dot_dimension_numbers<[1], [0], [0], [1], [0, 0, 1, 1], [], []>} : vector<64x4xf32>, vector<4x4xf32>, vector<64x4xf32> -> vector<64x4xf32>
    %32 = arith.addf %28, %31 : vector<64x4xf32>
    %33 = vector.shape_cast %24 : vector<8x8x4xf32> to vector<64x4xf32>
    %c20 = arith.constant 20 : index
    %c0_33 = arith.constant 0 : index
    %34 = vector.load %arg9[%c20, %c0_33] : memref<36x4xf32, #tpu.memory_space<vmem>>, vector<4x4xf32>
    %cst_34 = arith.constant dense<0.000000e+00> : vector<64x4xf32>
    %35 = tpu.matmul %33, %34, %cst_34 {dimension_numbers = #tpu.dot_dimension_numbers<[1], [0], [0], [1], [0, 0, 1, 1], [], []>} : vector<64x4xf32>, vector<4x4xf32>, vector<64x4xf32> -> vector<64x4xf32>
    %36 = arith.addf %32, %35 : vector<64x4xf32>
    %c0_35 = arith.constant 0 : index
    %c0_36 = arith.constant 0 : index
    %c0_37 = arith.constant 0 : index
    %c0_38 = arith.constant 0 : index
    %37 = vector.load %arg5[%c0_35, %c0_36, %c0_37, %c0_38] : memref<1x8x9x4xf32, #tpu.memory_space<vmem>>, vector<1x8x8x4xf32>
    %38 = vector.shape_cast %37 : vector<1x8x8x4xf32> to vector<8x8x4xf32>
    %c0_39 = arith.constant 0 : index
    %c0_40 = arith.constant 0 : index
    %c0_41 = arith.constant 0 : index
    %c0_42 = arith.constant 0 : index
    %39 = vector.load %arg8[%c0_39, %c0_40, %c0_41, %c0_42] : memref<1x8x8x4xf32, #tpu.memory_space<vmem>>, vector<1x8x8x4xf32>
    %40 = vector.shape_cast %39 : vector<1x8x8x4xf32> to vector<8x8x4xf32>
    %c0_43 = arith.constant 0 : index
    %c0_44 = arith.constant 0 : index
    %c1_45 = arith.constant 1 : index
    %c0_46 = arith.constant 0 : index
    %41 = vector.load %arg5[%c0_43, %c0_44, %c1_45, %c0_46] : memref<1x8x9x4xf32, #tpu.memory_space<vmem>>, vector<1x8x8x4xf32>
    %42 = vector.shape_cast %41 : vector<1x8x8x4xf32> to vector<8x8x4xf32>
    %43 = vector.shape_cast %38 : vector<8x8x4xf32> to vector<64x4xf32>
    %c24 = arith.constant 24 : index
    %c0_47 = arith.constant 0 : index
    %44 = vector.load %arg9[%c24, %c0_47] : memref<36x4xf32, #tpu.memory_space<vmem>>, vector<4x4xf32>
    %cst_48 = arith.constant dense<0.000000e+00> : vector<64x4xf32>
    %45 = tpu.matmul %43, %44, %cst_48 {dimension_numbers = #tpu.dot_dimension_numbers<[1], [0], [0], [1], [0, 0, 1, 1], [], []>} : vector<64x4xf32>, vector<4x4xf32>, vector<64x4xf32> -> vector<64x4xf32>
    %46 = arith.addf %36, %45 : vector<64x4xf32>
    %47 = vector.shape_cast %40 : vector<8x8x4xf32> to vector<64x4xf32>
    %c28 = arith.constant 28 : index
    %c0_49 = arith.constant 0 : index
    %48 = vector.load %arg9[%c28, %c0_49] : memref<36x4xf32, #tpu.memory_space<vmem>>, vector<4x4xf32>
    %cst_50 = arith.constant dense<0.000000e+00> : vector<64x4xf32>
    %49 = tpu.matmul %47, %48, %cst_50 {dimension_numbers = #tpu.dot_dimension_numbers<[1], [0], [0], [1], [0, 0, 1, 1], [], []>} : vector<64x4xf32>, vector<4x4xf32>, vector<64x4xf32> -> vector<64x4xf32>
    %50 = arith.addf %46, %49 : vector<64x4xf32>
    %51 = vector.shape_cast %42 : vector<8x8x4xf32> to vector<64x4xf32>
    %c32 = arith.constant 32 : index
    %c0_51 = arith.constant 0 : index
    %52 = vector.load %arg9[%c32, %c0_51] : memref<36x4xf32, #tpu.memory_space<vmem>>, vector<4x4xf32>
    %cst_52 = arith.constant dense<0.000000e+00> : vector<64x4xf32>
    %53 = tpu.matmul %51, %52, %cst_52 {dimension_numbers = #tpu.dot_dimension_numbers<[1], [0], [0], [1], [0, 0, 1, 1], [], []>} : vector<64x4xf32>, vector<4x4xf32>, vector<64x4xf32> -> vector<64x4xf32>
    %54 = arith.addf %50, %53 : vector<64x4xf32>
    %c0_53 = arith.constant 0 : index
    %c0_54 = arith.constant 0 : index
    %55 = vector.load %arg10[%c0_53, %c0_54] : memref<1x4xf32, #tpu.memory_space<vmem>>, vector<1x4xf32>
    %56 = vector.broadcast %55 : vector<1x4xf32> to vector<64x4xf32>
    %57 = arith.addf %54, %56 : vector<64x4xf32>
    %58 = vector.shape_cast %57 : vector<64x4xf32> to vector<8x8x4xf32>
    %c0_55 = arith.constant 0 : index
    %c0_56 = arith.constant 0 : index
    %c0_57 = arith.constant 0 : index
    %c0_58 = arith.constant 0 : index
    %59 = vector.load %arg11[%c0_55, %c0_56, %c0_57, %c0_58] : memref<1x8x8x4xf32, #tpu.memory_space<vmem>>, vector<1x8x8x4xf32>
    %60 = vector.shape_cast %59 : vector<1x8x8x4xf32> to vector<8x8x4xf32>
    %61 = vector.shape_cast %58 : vector<8x8x4xf32> to vector<1x8x8x4xf32>
    tpu.vector_store %arg11[%c0_55, %c0_56, %c0_57, %c0_58], %61 {strides = array<i32>} : memref<1x8x8x4xf32, #tpu.memory_space<vmem>>, vector<1x8x8x4xf32>,
    return
  }
  func.func @transform_0(%arg0: i32, %arg1: i32, %arg2: i32) -> (i32, i32, i32, i32) {
    %c0_i32 = arith.constant 0 : i32
    %c0_i32_0 = arith.constant 0 : i32
    %c0_i32_1 = arith.constant 0 : i32
    return %arg0, %arg1, %c0_i32, %c0_i32_0 : i32, i32, i32, i32
  }
  func.func @transform_1(%arg0: i32, %arg1: i32, %arg2: i32) -> (i32, i32, i32, i32) {
    %c0_i32 = arith.constant 0 : i32
    %c0_i32_0 = arith.constant 0 : i32
    %c0_i32_1 = arith.constant 0 : i32
    return %arg0, %arg1, %c0_i32, %c0_i32_0 : i32, i32, i32, i32
  }
  func.func @transform_2(%arg0: i32, %arg1: i32, %arg2: i32) -> (i32, i32, i32, i32) {
    %c0_i32 = arith.constant 0 : i32
    %c0_i32_0 = arith.constant 0 : i32
    %c0_i32_1 = arith.constant 0 : i32
    return %arg0, %arg1, %c0_i32, %c0_i32_0 : i32, i32, i32, i32
  }
  func.func @transform_3(%arg0: i32, %arg1: i32, %arg2: i32) -> (i32, i32, i32, i32) {
    %c0_i32 = arith.constant 0 : i32
    %c0_i32_0 = arith.constant 0 : i32
    %c0_i32_1 = arith.constant 0 : i32
    return %arg0, %arg1, %c0_i32, %c0_i32_0 : i32, i32, i32, i32
  }
  func.func @transform_4(%arg0: i32, %arg1: i32, %arg2: i32) -> (i32, i32, i32, i32) {
    %c0_i32 = arith.constant 0 : i32
    %c0_i32_0 = arith.constant 0 : i32
    %c0_i32_1 = arith.constant 0 : i32
    return %arg0, %arg1, %c0_i32, %c0_i32_0 : i32, i32, i32, i32
  }
  func.func @transform_5(%arg0: i32, %arg1: i32, %arg2: i32) -> (i32, i32, i32, i32) {
    %c0_i32 = arith.constant 0 : i32
    %c0_i32_0 = arith.constant 0 : i32
    %c0_i32_1 = arith.constant 0 : i32
    return %arg0, %arg1, %c0_i32, %c0_i32_0 : i32, i32, i32, i32
  }
  func.func @transform_6(%arg0: i32, %arg1: i32, %arg2: i32) -> (i32, i32) {
    %c0_i32 = arith.constant 0 : i32
    %c0_i32_0 = arith.constant 0 : i32
    return %c0_i32, %arg2 : i32, i32
  }
  func.func @transform_7(%arg0: i32, %arg1: i32, %arg2: i32) -> (i32, i32) {
    %c0_i32 = arith.constant 0 : i32
    %c0_i32_0 = arith.constant 0 : i32
    return %c0_i32, %arg2 : i32, i32
  }
  func.func @transform_8(%arg0: i32, %arg1: i32, %arg2: i32) -> (i32, i32, i32, i32) {
    %c0_i32 = arith.constant 0 : i32
    %c0_i32_0 = arith.constant 0 : i32
    %c0_i32_1 = arith.constant 0 : i32
    return %arg0, %arg1, %c0_i32, %c0_i32_0 : i32, i32, i32, i32
  }
}

module attributes {stable_mosaic.version = 11 : i64} {
  func.func @_downsample_kernel_direct(%arg0: i32, %arg1: i32, %arg2: i32, %arg3: memref<1x8x9x4xf32, #tpu.memory_space<vmem>>, %arg4: memref<1x8x9x4xf32, #tpu.memory_space<vmem>>, %arg5: memref<1x8x9x4xf32, #tpu.memory_space<vmem>>, %arg6: memref<1x8x8x4xf32, #tpu.memory_space<vmem>>, %arg7: memref<1x8x8x4xf32, #tpu.memory_space<vmem>>, %arg8: memref<1x8x8x4xf32, #tpu.memory_space<vmem>>, %arg9: memref<36x4xf32, #tpu.memory_space<vmem>>, %arg10: memref<1x4xf32, #tpu.memory_space<vmem>>, %arg11: memref<1x8x8x4xf32, #tpu.memory_space<vmem>>) attributes {dimension_semantics = [#tpu.dimension_semantics<parallel>, #tpu.dimension_semantics<parallel>, #tpu.dimension_semantics<arbitrary>], iteration_bounds = array<i64: 2, 1, 1>, scalar_prefetch = 0 : i64, scratch_operands = 0 : i64, tpu.core_type = #tpu.core_type<tc>, window_params = [{transform_indices = @transform_0, window_bounds = array<i64: 1, 8, 9, 4>}, {transform_indices = @transform_1, window_bounds = array<i64: 1, 8, 9, 4>}, {transform_indices = @transform_2, window_bounds = array<i64: 1, 8, 9, 4>}, {transform_indices = @transform_3, window_bounds = array<i64: 1, 8, 8, 4>}, {transform_indices = @transform_4, window_bounds = array<i64: 1, 8, 8, 4>}, {transform_indices = @transform_5, window_bounds = array<i64: 1, 8, 8, 4>}, {transform_indices = @transform_6, window_bounds = array<i64: 36, 4>}, {transform_indices = @transform_7, window_bounds = array<i64: 1, 4>}, {transform_indices = @transform_8, window_bounds = array<i64: 1, 8, 8, 4>}]} {
    %cst = arith.constant 0.000000e+00 : f32
    %0 = vector.broadcast %cst : f32 to vector<64x4xf32>
    %c0 = arith.constant 0 : index
    %c0_0 = arith.constant 0 : index
    %c0_1 = arith.constant 0 : index
    %c0_2 = arith.constant 0 : index
    %1 = vector.load %arg3[%c0, %c0_0, %c0_1, %c0_2] : memref<1x8x9x4xf32, #tpu.memory_space<vmem>>, vector<1x8x8x4xf32>
    %2 = vector.shape_cast %1 : vector<1x8x8x4xf32> to vector<8x8x4xf32>
    %c0_3 = arith.constant 0 : index
    %c0_4 = arith.constant 0 : index
    %c0_5 = arith.constant 0 : index
    %c0_6 = arith.constant 0 : index
    %3 = vector.load %arg6[%c0_3, %c0_4, %c0_5, %c0_6] : memref<1x8x8x4xf32, #tpu.memory_space<vmem>>, vector<1x8x8x4xf32>
    %4 = vector.shape_cast %3 : vector<1x8x8x4xf32> to vector<8x8x4xf32>
    %c0_7 = arith.constant 0 : index
    %c0_8 = arith.constant 0 : index
    %c1 = arith.constant 1 : index
    %c0_9 = arith.constant 0 : index
    %5 = vector.load %arg3[%c0_7, %c0_8, %c1, %c0_9] : memref<1x8x9x4xf32, #tpu.memory_space<vmem>>, vector<1x8x8x4xf32>
    %6 = vector.shape_cast %5 : vector<1x8x8x4xf32> to vector<8x8x4xf32>
    %7 = vector.shape_cast %2 : vector<8x8x4xf32> to vector<64x4xf32>
    %c0_10 = arith.constant 0 : index
    %c0_11 = arith.constant 0 : index
    %8 = vector.load %arg9[%c0_10, %c0_11] : memref<36x4xf32, #tpu.memory_space<vmem>>, vector<4x4xf32>
    %cst_12 = arith.constant dense<0.000000e+00> : vector<64x4xf32>
    %9 = tpu.matmul %7, %8, %cst_12 {dimension_numbers = #tpu.dot_dimension_numbers<[1], [0], [0], [1], [0, 0, 1, 1], [], []>} : vector<64x4xf32>, vector<4x4xf32>, vector<64x4xf32> -> vector<64x4xf32>
    %10 = arith.addf %0, %9 : vector<64x4xf32>
    %11 = vector.shape_cast %4 : vector<8x8x4xf32> to vector<64x4xf32>
    %c4 = arith.constant 4 : index
    %c0_13 = arith.constant 0 : index
    %12 = vector.load %arg9[%c4, %c0_13] : memref<36x4xf32, #tpu.memory_space<vmem>>, vector<4x4xf32>
    %cst_14 = arith.constant dense<0.000000e+00> : vector<64x4xf32>
    %13 = tpu.matmul %11, %12, %cst_14 {dimension_numbers = #tpu.dot_dimension_numbers<[1], [0], [0], [1], [0, 0, 1, 1], [], []>} : vector<64x4xf32>, vector<4x4xf32>, vector<64x4xf32> -> vector<64x4xf32>
    %14 = arith.addf %10, %13 : vector<64x4xf32>
    %15 = vector.shape_cast %6 : vector<8x8x4xf32> to vector<64x4xf32>
    %c8 = arith.constant 8 : index
    %c0_15 = arith.constant 0 : index
    %16 = vector.load %arg9[%c8, %c0_15] : memref<36x4xf32, #tpu.memory_space<vmem>>, vector<4x4xf32>
    %cst_16 = arith.constant dense<0.000000e+00> : vector<64x4xf32>
    %17 = tpu.matmul %15, %16, %cst_16 {dimension_numbers = #tpu.dot_dimension_numbers<[1], [0], [0], [1], [0, 0, 1, 1], [], []>} : vector<64x4xf32>, vector<4x4xf32>, vector<64x4xf32> -> vector<64x4xf32>
    %18 = arith.addf %14, %17 : vector<64x4xf32>
    %c0_17 = arith.constant 0 : index
    %c0_18 = arith.constant 0 : index
    %c0_19 = arith.constant 0 : index
    %c0_20 = arith.constant 0 : index
    %19 = vector.load %arg4[%c0_17, %c0_18, %c0_19, %c0_20] : memref<1x8x9x4xf32, #tpu.memory_space<vmem>>, vector<1x8x8x4xf32>
    %20 = vector.shape_cast %19 : vector<1x8x8x4xf32> to vector<8x8x4xf32>
    %c0_21 = arith.constant 0 : index
    %c0_22 = arith.constant 0 : index
    %c0_23 = arith.constant 0 : index
    %c0_24 = arith.constant 0 : index
    %21 = vector.load %arg7[%c0_21, %c0_22, %c0_23, %c0_24] : memref<1x8x8x4xf32, #tpu.memory_space<vmem>>, vector<1x8x8x4xf32>
    %22 = vector.shape_cast %21 : vector<1x8x8x4xf32> to vector<8x8x4xf32>
    %c0_25 = arith.constant 0 : index
    %c0_26 = arith.constant 0 : index
    %c1_27 = arith.constant 1 : index
    %c0_28 = arith.constant 0 : index
    %23 = vector.load %arg4[%c0_25, %c0_26, %c1_27, %c0_28] : memref<1x8x9x4xf32, #tpu.memory_space<vmem>>, vector<1x8x8x4xf32>
    %24 = vector.shape_cast %23 : vector<1x8x8x4xf32> to vector<8x8x4xf32>
    %25 = vector.shape_cast %20 : vector<8x8x4xf32> to vector<64x4xf32>
    %c12 = arith.constant 12 : index
    %c0_29 = arith.constant 0 : index
    %26 = vector.load %arg9[%c12, %c0_29] : memref<36x4xf32, #tpu.memory_space<vmem>>, vector<4x4xf32>
    %cst_30 = arith.constant dense<0.000000e+00> : vector<64x4xf32>
    %27 = tpu.matmul %25, %26, %cst_30 {dimension_numbers = #tpu.dot_dimension_numbers<[1], [0], [0], [1], [0, 0, 1, 1], [], []>} : vector<64x4xf32>, vector<4x4xf32>, vector<64x4xf32> -> vector<64x4xf32>
    %28 = arith.addf %18, %27 : vector<64x4xf32>
    %29 = vector.shape_cast %22 : vector<8x8x4xf32> to vector<64x4xf32>
    %c16 = arith.constant 16 : index
    %c0_31 = arith.constant 0 : index
    %30 = vector.load %arg9[%c16, %c0_31] : memref<36x4xf32, #tpu.memory_space<vmem>>, vector<4x4xf32>
    %cst_32 = arith.constant dense<0.000000e+00> : vector<64x4xf32>
    %31 = tpu.matmul %29, %30, %cst_32 {dimension_numbers = #tpu.dot_dimension_numbers<[1], [0], [0], [1], [0, 0, 1, 1], [], []>} : vector<64x4xf32>, vector<4x4xf32>, vector<64x4xf32> -> vector<64x4xf32>
    %32 = arith.addf %28, %31 : vector<64x4xf32>
    %33 = vector.shape_cast %24 : vector<8x8x4xf32> to vector<64x4xf32>
    %c20 = arith.constant 20 : index
    %c0_33 = arith.constant 0 : index
    %34 = vector.load %arg9[%c20, %c0_33] : memref<36x4xf32, #tpu.memory_space<vmem>>, vector<4x4xf32>
    %cst_34 = arith.constant dense<0.000000e+00> : vector<64x4xf32>
    %35 = tpu.matmul %33, %34, %cst_34 {dimension_numbers = #tpu.dot_dimension_numbers<[1], [0], [0], [1], [0, 0, 1, 1], [], []>} : vector<64x4xf32>, vector<4x4xf32>, vector<64x4xf32> -> vector<64x4xf32>
    %36 = arith.addf %32, %35 : vector<64x4xf32>
    %c0_35 = arith.constant 0 : index
    %c0_36 = arith.constant 0 : index
    %c0_37 = arith.constant 0 : index
    %c0_38 = arith.constant 0 : index
    %37 = vector.load %arg5[%c0_35, %c0_36, %c0_37, %c0_38] : memref<1x8x9x4xf32, #tpu.memory_space<vmem>>, vector<1x8x8x4xf32>
    %38 = vector.shape_cast %37 : vector<1x8x8x4xf32> to vector<8x8x4xf32>
    %c0_39 = arith.constant 0 : index
    %c0_40 = arith.constant 0 : index
    %c0_41 = arith.constant 0 : index
    %c0_42 = arith.constant 0 : index
    %39 = vector.load %arg8[%c0_39, %c0_40, %c0_41, %c0_42] : memref<1x8x8x4xf32, #tpu.memory_space<vmem>>, vector<1x8x8x4xf32>
    %40 = vector.shape_cast %39 : vector<1x8x8x4xf32> to vector<8x8x4xf32>
    %c0_43 = arith.constant 0 : index
    %c0_44 = arith.constant 0 : index
    %c1_45 = arith.constant 1 : index
    %c0_46 = arith.constant 0 : index
    %41 = vector.load %arg5[%c0_43, %c0_44, %c1_45, %c0_46] : memref<1x8x9x4xf32, #tpu.memory_space<vmem>>, vector<1x8x8x4xf32>
    %42 = vector.shape_cast %41 : vector<1x8x8x4xf32> to vector<8x8x4xf32>
    %43 = vector.shape_cast %38 : vector<8x8x4xf32> to vector<64x4xf32>
    %c24 = arith.constant 24 : index
    %c0_47 = arith.constant 0 : index
    %44 = vector.load %arg9[%c24, %c0_47] : memref<36x4xf32, #tpu.memory_space<vmem>>, vector<4x4xf32>
    %cst_48 = arith.constant dense<0.000000e+00> : vector<64x4xf32>
    %45 = tpu.matmul %43, %44, %cst_48 {dimension_numbers = #tpu.dot_dimension_numbers<[1], [0], [0], [1], [0, 0, 1, 1], [], []>} : vector<64x4xf32>, vector<4x4xf32>, vector<64x4xf32> -> vector<64x4xf32>
    %46 = arith.addf %36, %45 : vector<64x4xf32>
    %47 = vector.shape_cast %40 : vector<8x8x4xf32> to vector<64x4xf32>
    %c28 = arith.constant 28 : index
    %c0_49 = arith.constant 0 : index
    %48 = vector.load %arg9[%c28, %c0_49] : memref<36x4xf32, #tpu.memory_space<vmem>>, vector<4x4xf32>
    %cst_50 = arith.constant dense<0.000000e+00> : vector<64x4xf32>
    %49 = tpu.matmul %47, %48, %cst_50 {dimension_numbers = #tpu.dot_dimension_numbers<[1], [0], [0], [1], [0, 0, 1, 1], [], []>} : vector<64x4xf32>, vector<4x4xf32>, vector<64x4xf32> -> vector<64x4xf32>
    %50 = arith.addf %46, %49 : vector<64x4xf32>
    %51 = vector.shape_cast %42 : vector<8x8x4xf32> to vector<64x4xf32>
    %c32 = arith.constant 32 : index
    %c0_51 = arith.constant 0 : index
    %52 = vector.load %arg9[%c32, %c0_51] : memref<36x4xf32, #tpu.memory_space<vmem>>, vector<4x4xf32>
    %cst_52 = arith.constant dense<0.000000e+00> : vector<64x4xf32>
    %53 = tpu.matmul %51, %52, %cst_52 {dimension_numbers = #tpu.dot_dimension_numbers<[1], [0], [0], [1], [0, 0, 1, 1], [], []>} : vector<64x4xf32>, vector<4x4xf32>, vector<64x4xf32> -> vector<64x4xf32>
    %54 = arith.addf %50, %53 : vector<64x4xf32>
    %c0_53 = arith.constant 0 : index
    %c0_54 = arith.constant 0 : index
    %55 = vector.load %arg10[%c0_53, %c0_54] : memref<1x4xf32, #tpu.memory_space<vmem>>, vector<1x4xf32>
    %56 = vector.broadcast %55 : vector<1x4xf32> to vector<64x4xf32>
    %57 = arith.addf %54, %56 : vector<64x4xf32>
    %58 = vector.shape_cast %57 : vector<64x4xf32> to vector<8x8x4xf32>
    %c0_55 = arith.constant 0 : index
    %c0_56 = arith.constant 0 : index
    %c0_57 = arith.constant 0 : index
    %c0_58 = arith.constant 0 : index
    %59 = vector.load %arg11[%c0_55, %c0_56, %c0_57, %c0_58] : memref<1x8x8x4xf32, #tpu.memory_space<vmem>>, vector<1x8x8x4xf32>
    %60 = vector.shape_cast %59 : vector<1x8x8x4xf32> to vector<8x8x4xf32>
    %61 = vector.shape_cast %58 : vector<8x8x4xf32> to vector<1x8x8x4xf32>
    tpu.vector_store %arg11[%c0_55, %c0_56, %c0_57, %c0_58], %61 {strides = array<i32>} : memref<1x8x8x4xf32, #tpu.memory_space<vmem>>, vector<1x8x8x4xf32>,
    return
  }
  func.func @transform_0(%arg0: i32, %arg1: i32, %arg2: i32) -> (i32, i32, i32, i32) {
    %c0_i32 = arith.constant 0 : i32
    %c0_i32_0 = arith.constant 0 : i32
    %c0_i32_1 = arith.constant 0 : i32
    return %arg0, %arg1, %c0_i32, %c0_i32_0 : i32, i32, i32, i32
  }
  func.func @transform_1(%arg0: i32, %arg1: i32, %arg2: i32) -> (i32, i32, i32, i32) {
    %c0_i32 = arith.constant 0 : i32
    %c0_i32_0 = arith.constant 0 : i32
    %c0_i32_1 = arith.constant 0 : i32
    return %arg0, %arg1, %c0_i32, %c0_i32_0 : i32, i32, i32, i32
  }
  func.func @transform_2(%arg0: i32, %arg1: i32, %arg2: i32) -> (i32, i32, i32, i32) {
    %c0_i32 = arith.constant 0 : i32
    %c0_i32_0 = arith.constant 0 : i32
    %c0_i32_1 = arith.constant 0 : i32
    return %arg0, %arg1, %c0_i32, %c0_i32_0 : i32, i32, i32, i32
  }
  func.func @transform_3(%arg0: i32, %arg1: i32, %arg2: i32) -> (i32, i32, i32, i32) {
    %c0_i32 = arith.constant 0 : i32
    %c0_i32_0 = arith.constant 0 : i32
    %c0_i32_1 = arith.constant 0 : i32
    return %arg0, %arg1, %c0_i32, %c0_i32_0 : i32, i32, i32, i32
  }
  func.func @transform_4(%arg0: i32, %arg1: i32, %arg2: i32) -> (i32, i32, i32, i32) {
    %c0_i32 = arith.constant 0 : i32
    %c0_i32_0 = arith.constant 0 : i32
    %c0_i32_1 = arith.constant 0 : i32
    return %arg0, %arg1, %c0_i32, %c0_i32_0 : i32, i32, i32, i32
  }
  func.func @transform_5(%arg0: i32, %arg1: i32, %arg2: i32) -> (i32, i32, i32, i32) {
    %c0_i32 = arith.constant 0 : i32
    %c0_i32_0 = arith.constant 0 : i32
    %c0_i32_1 = arith.constant 0 : i32
    return %arg0, %arg1, %c0_i32, %c0_i32_0 : i32, i32, i32, i32
  }
  func.func @transform_6(%arg0: i32, %arg1: i32, %arg2: i32) -> (i32, i32) {
    %c0_i32 = arith.constant 0 : i32
    %c0_i32_0 = arith.constant 0 : i32
    return %c0_i32, %arg2 : i32, i32
  }
  func.func @transform_7(%arg0: i32, %arg1: i32, %arg2: i32) -> (i32, i32) {
    %c0_i32 = arith.constant 0 : i32
    %c0_i32_0 = arith.constant 0 : i32
    return %c0_i32, %arg2 : i32, i32
  }
  func.func @transform_8(%arg0: i32, %arg1: i32, %arg2: i32) -> (i32, i32, i32, i32) {
    %c0_i32 = arith.constant 0 : i32
    %c0_i32_0 = arith.constant 0 : i32
    %c0_i32_1 = arith.constant 0 : i32
    return %arg0, %arg1, %c0_i32, %c0_i32_0 : i32, i32, i32, i32
  }
}

</mosaic_0001>

<bundles_post_ra>
// kernel: tpu_custom_call.1
= control target key start
LH: loop header
LB: loop body
LE: loop exit
PB: predicated region body
PF: predicated region fallthrough
CT: control target
= control target key end

     0   :  { %s1767_s27 = smov 0   ;;  %s1769_s28 = smov 0   ;;  %s2109_s0 = inlined_call_operand.vmem [shape: f32[2,8,9,4], index: 0, kind: input, shape index: {}]   ;;  %s2110_s1 = inlined_call_operand.vmem [shape: f32[2,8,9,4], index: 1, kind: input, shape index: {}]   ;;  %s2111_s2 = inlined_call_operand.vmem [shape: f32[2,8,9,4], index: 2, kind: input, shape index: {}]   ;;  %s2112_s3 = inlined_call_operand.vmem [shape: f32[2,8,8,4], index: 3, kind: input, shape index: {}]   ;;  %s2113_s4 = inlined_call_operand.vmem [shape: f32[2,8,8,4], index: 4, kind: input, shape index: {}]   ;;  %s2114_s5 = inlined_call_operand.vmem [shape: f32[2,8,8,4], index: 5, kind: input, shape index: {}]   ;;  %s2115_s6 = inlined_call_operand.vmem [shape: f32[36,4], index: 6, kind: input, shape index: {}]   ;;  %s2116_s7 = inlined_call_operand.vmem [shape: f32[1,4], index: 7, kind: input, shape index: {}]   ;;  %s2117_s8 = inlined_call_operand.vmem [shape: f32[2,8,8,4], index: 8, kind: output, shape index: {}]  }
   0x1   :  { %s1771_s29 = smov 0  }
   0x2 LB: > { %s37_s30 = sadd.s32 1, %s1716_s28  ;;  %p1565_p0 = scmp.ge.s32.totalorder %s1720_s29, 1  ;;  %s1720_s29 = sphi %s1771_s29, %s18_s29   ;;  %s1716_s28 = sphi %s1769_s28, %s2119_s28   ;;  %s1712_s27 = sphi %s1767_s27, %s2118_s27  }
   0x3   : > { %p39_p1 = scmp.ge.s32.totalorder %s37_s30, 2  ;;  %p395_p2 = scmp.lt.s32.totalorder %s1720_s29, 3 }
   0x5   : > { %s2121_s30 = smov (%p39_p1, %s37_s30), 0  ;;  %p396_p3 = pnand %p1565_p0, %p395_p2 }
   0x6   : > { %p493_p4 = scmp.lt.s32.totalorder (!%p396_p3), %s1712_s27, 1 }
   0x7   : > { %399 = sbr.rel (%p396_p3) target bundleno = 294 (0x126), region = 52 }
   0xc   : > { %v597_v0 = vld [vmem:[%s2115_s6 + $0x4] sm:$0xf]  ;;  %vm623_vm0 = vcmask 1043456   ;;  %v736_v1 = vld [vmem:[%s2115_s6 + $0x8] sm:$0xf]  ;;  %s2123_s27 = smov (!%p493_p4, %s1712_s27), 1 }
   0xd   : > { %1670 = vmatpush.msk.msra.mxu1 %vm623_vm0, %v597_v0  ;;  %1671 = vmatpush.msk.msra.mxu2 %vm623_vm0, %v597_v0  ;;  %v837_v2 = vld [vmem:[%s2115_s6 + $0xc] sm:$0xf]  ;;  %v596_v3 = vld [vmem:[%s2115_s6] sm:$0xf]  ;;  %v914_v4 = vld [vmem:[%s2115_s6 + $0x10] sm:$0xf] }
   0xe   : > { %1672 = vmatpush.msk.msra.mxu3 %vm623_vm0, %v597_v0  ;;  %s1809_s19 = sshll.u32 %s2123_s27, 6  ;;  %1580 = vmatpush.msk.msra.mxu0 %vm623_vm0, %v597_v0  ;;  %vm598_vm1 = vcmask 31744   ;;  %v1092_v5 = vld [vmem:[%s2115_s6 + $0x18] sm:$0xf]  ;;  %v1169_v6 = vld [vmem:[%s2115_s6 + $0x1c] sm:$0xf] }
   0xf   : > { %1598 = vmatpush.msk.msrb.mxu2 %vm623_vm0, %v736_v1  ;;  %1589 = vmatpush.msk.msrb.mxu1 %vm623_vm0, %v596_v3  ;;  %s533_s22 = scalar_lea.vmem %s2112_s3, %s1809_s19  ;;  %v991_v11 = vld [vmem:[%s2115_s6 + $0x14] sm:$0xf]  ;;  %v1246_v12 = vld [vmem:[%s2115_s6 + $0x20] sm:$0xf]  ;;  %s1838_s13 = sshll.u32 %s2123_s27, 7 }
  0x10   : > { %1607 = vmatpush.msk.msrb.mxu3 %vm623_vm0, %v837_v2  ;;  %1616 = vmatpush.msk.msrb.mxu0 %vm623_vm0, %v914_v4  ;;  %v582_v7 = vld [vmem:[%s533_s22 + $0x10] sm:$0xff]  ;;  %v584_v8 = vld [vmem:[%s533_s22 + $0x20] sm:$0xff]  ;;  %v583_v13 = vld [vmem:[%s533_s22 + $0x18] sm:$0xff]  ;;  %s1848_s16 = scalar_lea.vmem %s2109_s0, %s1838_s13  ;;  %s1854_s27 = scalar_lea.vmem %s2110_s1, %s1838_s13 }
  0x11   : > { %v586_v9 = vld [vmem:[%s533_s22 + $0x30] sm:$0xff]  ;;  %1583 = vmatmul.msk.f32.vlgmr.msra.gmra.mxu1 %vm598_vm1, %v582_v7  ;;  %1585 = vmatmul.msk.f32.vlgmr.msra.gmra.mxu2 %vm598_vm1, %v584_v8  ;;  %v580_v10 = vld [vmem:[%s533_s22] sm:$0xff]  ;;  %v585_v14 = vld [vmem:[%s533_s22 + $0x28] sm:$0xff]  ;;  %s1930_s25 = scalar_lea.vmem %s2111_s2, %s1838_s13  ;;  %s1936_s10 = scalar_lea.vmem %s2114_s5, %s1809_s19 }
  0x12   : > { %1587 = vmatmul.msk.f32.vlgmr.msra.gmra.mxu3 %vm598_vm1, %v586_v9  ;;  %1581 = vmatmul.msk.f32.vlgmr.msra.gmra.mxu0 %vm598_vm1, %v580_v10  ;;  %v587_v15 = vld [vmem:[%s533_s22 + $0x38] sm:$0xff]  ;;  %v581_v16 = vld [vmem:[%s533_s22 + $0x8] sm:$0xff]  ;;  %s1860_s22 = scalar_lea.vmem %s2113_s4, %s1809_s19  ;;  %v572_v17 = vld [vmem:[%s1848_s16] sm:$0xff]  ;;  %s2054_s15 = scalar_lea.vmem %s2117_s8, %s1809_s19 }
  0x13   : > { %1634 = vmatpush.msk.msra.mxu2 %vm623_vm0, %v1092_v5  ;;  %1643 = vmatpush.msk.msra.mxu3 %vm623_vm0, %v1169_v6  ;;  %v588_v18 = vld [vmem:[%s1848_s16 + $0x1] sm:$0xff]  ;;  %v573_v21 = vld [vmem:[%s1848_s16 + $0x10] sm:$0xff]  ;;  %v824_v32 = vld [vmem:[%s1860_s22 + $0x18] sm:$0xff] }
  0x14   : > { %1625 = vmatpush.msk.msra.mxu1 %vm623_vm0, %v991_v11  ;;  %1652 = vmatpush.msk.msra.mxu0 %vm623_vm0, %v1246_v12  ;;  %v813_v19 = vld [vmem:[%s1854_s27] sm:$0xff]  ;;  %v589_v22 = vld [vmem:[%s1848_s16 + $0x11] sm:$0xff]  ;;  %v822_v24 = vld [vmem:[%s1860_s22 + $0x8] sm:$0xff] }
  0x15   : > { %v821_v20 = vld [vmem:[%s1860_s22] sm:$0xff]  ;;  %v814_v23 = vld [vmem:[%s1854_s27 + $0x10] sm:$0xff]  ;;  %v826_v40 = vld [vmem:[%s1860_s22 + $0x28] sm:$0xff] }
  0x16   : > { %v574_v25 = vld [vmem:[%s1848_s16 + $0x20] sm:$0xff]  ;;  %v823_v28 = vld [vmem:[%s1860_s22 + $0x10] sm:$0xff]  ;;  %v828_v48 = vld [vmem:[%s1860_s22 + $0x38] sm:$0xff] }
  0x17   : > { %v590_v26 = vld [vmem:[%s1848_s16 + $0x21] sm:$0xff]  ;;  %v575_v29 = vld [vmem:[%s1848_s16 + $0x30] sm:$0xff]  ;;  %v1079_v63 = vld [vmem:[%s1936_s10 + $0x18] sm:$0xff] }
  0x18   : > { %v815_v27 = vld [vmem:[%s1854_s27 + $0x20] sm:$0xff]  ;;  %v591_v30 = vld [vmem:[%s1848_s16 + $0x31] sm:$0xff]  ;;  %v1077_v55 = vld [vmem:[%s1936_s10 + $0x8] sm:$0xff] }
  0x19   : > { %1584 = vmatmul.msk.f32.gmra.mxu1 %vm598_vm1, %v583_v13  ;;  %1586 = vmatmul.msk.f32.gmra.mxu2 %vm598_vm1, %v585_v14  ;;  %v816_v31 = vld [vmem:[%s1854_s27 + $0x30] sm:$0xff]  ;;  %v576_v33 = vld [vmem:[%s1848_s16 + $0x40] sm:$0xff]  ;;  %v1081_v7 = vld [vmem:[%s1936_s10 + $0x28] sm:$0xff] }
  0x1a   : > { %1588 = vmatmul.msk.f32.gmra.mxu3 %vm598_vm1, %v587_v15  ;;  %1582 = vmatmul.msk.f32.gmra.mxu0 %vm598_vm1, %v581_v16  ;;  %v592_v34 = vld [vmem:[%s1848_s16 + $0x41] sm:$0xff]  ;;  %v577_v37 = vld [vmem:[%s1848_s16 + $0x50] sm:$0xff] }
  0x1b   : > { %v817_v35 = vld [vmem:[%s1854_s27 + $0x40] sm:$0xff]  ;;  %v593_v38 = vld [vmem:[%s1848_s16 + $0x51] sm:$0xff] }
  0x1c   : > { %v825_v36 = vld [vmem:[%s1860_s22 + $0x20] sm:$0xff]  ;;  %v818_v39 = vld [vmem:[%s1854_s27 + $0x50] sm:$0xff] }
  0x1d   : > { %v578_v41 = vld [vmem:[%s1848_s16 + $0x60] sm:$0xff]  ;;  %v827_v44 = vld [vmem:[%s1860_s22 + $0x30] sm:$0xff] }
  0x1e   : > { %v594_v42 = vld [vmem:[%s1848_s16 + $0x61] sm:$0xff]  ;;  %v579_v45 = vld [vmem:[%s1848_s16 + $0x70] sm:$0xff] }
  0x1f   : > { %v819_v43 = vld [vmem:[%s1854_s27 + $0x60] sm:$0xff]  ;;  %v595_v46 = vld [vmem:[%s1848_s16 + $0x71] sm:$0xff] }
  0x20   : > { %v820_v47 = vld [vmem:[%s1854_s27 + $0x70] sm:$0xff]  ;;  %v829_v49 = vld [vmem:[%s1854_s27 + $0x1] sm:$0xff] }
  0x21   : > { %1590 = vmatmul.msk.f32.vlgmr.msrb.gmra.mxu1 %vm598_vm1, %v572_v17  ;;  %1599 = vmatmul.msk.f32.vlgmr.msrb.gmra.mxu2 %vm598_vm1, %v588_v18  ;;  %v1068_v50 = vld [vmem:[%s1930_s25] sm:$0xff]  ;;  %v830_v53 = vld [vmem:[%s1854_s27 + $0x11] sm:$0xff] }
  0x22   : > { %1608 = vmatmul.msk.f32.vlgmr.msrb.gmra.mxu3 %vm598_vm1, %v813_v19  ;;  %1617 = vmatmul.msk.f32.vlgmr.msrb.gmra.mxu0 %vm598_vm1, %v821_v20  ;;  %v1076_v51 = vld [vmem:[%s1936_s10] sm:$0xff]  ;;  %v1069_v54 = vld [vmem:[%s1930_s25 + $0x10] sm:$0xff]  ;;  %v1083_v20 = vld [vmem:[%s1936_s10 + $0x38] sm:$0xff] }
  0x23   : > { %v1084_v52 = vld [vmem:[%s1930_s25 + $0x1] sm:$0xff]  ;;  %v1085_v56 = vld [vmem:[%s1930_s25 + $0x11] sm:$0xff] }
  0x24   : > { %v831_v57 = vld [vmem:[%s1854_s27 + $0x21] sm:$0xff]  ;;  %v1078_v59 = vld [vmem:[%s1936_s10 + $0x10] sm:$0xff] }
  0x25   : > { %v1070_v58 = vld [vmem:[%s1930_s25 + $0x20] sm:$0xff]  ;;  %v832_v61 = vld [vmem:[%s1854_s27 + $0x31] sm:$0xff] }
  0x26   : > { %v1086_v60 = vld [vmem:[%s1930_s25 + $0x21] sm:$0xff]  ;;  %v1071_v62 = vld [vmem:[%s1930_s25 + $0x30] sm:$0xff] }
  0x27   : > { %v1087_v0 = vld [vmem:[%s1930_s25 + $0x31] sm:$0xff]  ;;  %v833_v1 = vld [vmem:[%s1854_s27 + $0x41] sm:$0xff] }
  0x28   : > { %v1072_v2 = vld [vmem:[%s1930_s25 + $0x40] sm:$0xff]  ;;  %v834_v5 = vld [vmem:[%s1854_s27 + $0x51] sm:$0xff] }
  0x29   : > { %1591 = vmatmul.msk.f32.gmra.mxu1 %vm598_vm1, %v573_v21  ;;  %1600 = vmatmul.msk.f32.gmra.mxu2 %vm598_vm1, %v589_v22  ;;  %v1080_v3 = vld [vmem:[%s1936_s10 + $0x20] sm:$0xff]  ;;  %v1073_v6 = vld [vmem:[%s1930_s25 + $0x50] sm:$0xff] }
  0x2a   : > { %1609 = vmatmul.msk.f32.gmra.mxu3 %vm598_vm1, %v814_v23  ;;  %1618 = vmatmul.msk.f32.gmra.mxu0 %vm598_vm1, %v822_v24  ;;  %v1088_v4 = vld [vmem:[%s1930_s25 + $0x41] sm:$0xff]  ;;  %v1089_v8 = vld [vmem:[%s1930_s25 + $0x51] sm:$0xff] }
  0x2b   : > { %v835_v10 = vld [vmem:[%s1854_s27 + $0x61] sm:$0xff]  ;;  %v1082_v12 = vld [vmem:[%s1936_s10 + $0x30] sm:$0xff] }
  0x2c   : > { %v1074_v11 = vld [vmem:[%s1930_s25 + $0x60] sm:$0xff]  ;;  %v836_v18 = vld [vmem:[%s1854_s27 + $0x71] sm:$0xff] }
  0x2d   : > { %v1090_v14 = vld [vmem:[%s1930_s25 + $0x61] sm:$0xff]  ;;  %v1075_v19 = vld [vmem:[%s1930_s25 + $0x70] sm:$0xff] }
  0x2e   : > { %v1091_v22 = vld [vmem:[%s1930_s25 + $0x71] sm:$0xff] }
  0x31   : > { %1592 = vmatmul.msk.f32.gmra.mxu1 %vm598_vm1, %v574_v25  ;;  %1601 = vmatmul.msk.f32.gmra.mxu2 %vm598_vm1, %v590_v26 }
  0x32   : > { %1610 = vmatmul.msk.f32.gmra.mxu3 %vm598_vm1, %v815_v27  ;;  %1619 = vmatmul.msk.f32.gmra.mxu0 %vm598_vm1, %v823_v28 }
  0x39   : > { %1593 = vmatmul.msk.f32.gmra.mxu1 %vm598_vm1, %v575_v29  ;;  %1602 = vmatmul.msk.f32.gmra.mxu2 %vm598_vm1, %v591_v30 }
  0x3a   : > { %1611 = vmatmul.msk.f32.gmra.mxu3 %vm598_vm1, %v816_v31  ;;  %1620 = vmatmul.msk.f32.gmra.mxu0 %vm598_vm1, %v824_v32 }
  0x41   : > { %1594 = vmatmul.msk.f32.gmra.mxu1 %vm598_vm1, %v576_v33  ;;  %1603 = vmatmul.msk.f32.gmra.mxu2 %vm598_vm1, %v592_v34 }
  0x42   : > { %1612 = vmatmul.msk.f32.gmra.mxu3 %vm598_vm1, %v817_v35  ;;  %1621 = vmatmul.msk.f32.gmra.mxu0 %vm598_vm1, %v825_v36 }
  0x49   : > { %1595 = vmatmul.msk.f32.gmra.mxu1 %vm598_vm1, %v577_v37  ;;  %1604 = vmatmul.msk.f32.gmra.mxu2 %vm598_vm1, %v593_v38 }
  0x4a   : > { %1613 = vmatmul.msk.f32.gmra.mxu3 %vm598_vm1, %v818_v39  ;;  %1622 = vmatmul.msk.f32.gmra.mxu0 %vm598_vm1, %v826_v40 }
  0x51   : > { %1596 = vmatmul.msk.f32.gmra.mxu1 %vm598_vm1, %v578_v41  ;;  %1605 = vmatmul.msk.f32.gmra.mxu2 %vm598_vm1, %v594_v42 }
  0x52   : > { %1614 = vmatmul.msk.f32.gmra.mxu3 %vm598_vm1, %v819_v43  ;;  %1623 = vmatmul.msk.f32.gmra.mxu0 %vm598_vm1, %v827_v44 }
  0x59   : > { %1597 = vmatmul.msk.f32.gmra.mxu1 %vm598_vm1, %v579_v45  ;;  %1606 = vmatmul.msk.f32.gmra.mxu2 %vm598_vm1, %v595_v46 }
  0x5a   : > { %1615 = vmatmul.msk.f32.gmra.mxu3 %vm598_vm1, %v820_v47  ;;  %1624 = vmatmul.msk.f32.gmra.mxu0 %vm598_vm1, %v828_v48 }
  0x61   : > { %1626 = vmatmul.msk.f32.vlgmr.msra.gmra.mxu1 %vm598_vm1, %v829_v49  ;;  %1635 = vmatmul.msk.f32.vlgmr.msra.gmra.mxu2 %vm598_vm1, %v1068_v50 }
  0x62   : > { %1644 = vmatmul.msk.f32.vlgmr.msra.gmra.mxu3 %vm598_vm1, %v1076_v51  ;;  %1653 = vmatmul.msk.f32.vlgmr.msra.gmra.mxu0 %vm598_vm1, %v1084_v52 }
  0x69   : > { %1627 = vmatmul.msk.f32.gmra.mxu1 %vm598_vm1, %v830_v53  ;;  %1636 = vmatmul.msk.f32.gmra.mxu2 %vm598_vm1, %v1069_v54 }
  0x6a   : > { %1645 = vmatmul.msk.f32.gmra.mxu3 %vm598_vm1, %v1077_v55  ;;  %1654 = vmatmul.msk.f32.gmra.mxu0 %vm598_vm1, %v1085_v56 }
  0x71   : > { %1628 = vmatmul.msk.f32.gmra.mxu1 %vm598_vm1, %v831_v57  ;;  %1637 = vmatmul.msk.f32.gmra.mxu2 %vm598_vm1, %v1070_v58 }
  0x72   : > { %1646 = vmatmul.msk.f32.gmra.mxu3 %vm598_vm1, %v1078_v59  ;;  %1655 = vmatmul.msk.f32.gmra.mxu0 %vm598_vm1, %v1086_v60 }
  0x79   : > { %1629 = vmatmul.msk.f32.gmra.mxu1 %vm598_vm1, %v832_v61  ;;  %1638 = vmatmul.msk.f32.gmra.mxu2 %vm598_vm1, %v1071_v62 }
  0x7a   : > { %1647 = vmatmul.msk.f32.gmra.mxu3 %vm598_vm1, %v1079_v63  ;;  %1656 = vmatmul.msk.f32.gmra.mxu0 %vm598_vm1, %v1087_v0 }
  0x81   : > { %1630 = vmatmul.msk.f32.gmra.mxu1 %vm598_vm1, %v833_v1  ;;  %1639 = vmatmul.msk.f32.gmra.mxu2 %vm598_vm1, %v1072_v2 }
  0x82   : > { %1648 = vmatmul.msk.f32.gmra.mxu3 %vm598_vm1, %v1080_v3  ;;  %1657 = vmatmul.msk.f32.gmra.mxu0 %vm598_vm1, %v1088_v4 }
  0x89   : > { %1631 = vmatmul.msk.f32.gmra.mxu1 %vm598_vm1, %v834_v5  ;;  %1640 = vmatmul.msk.f32.gmra.mxu2 %vm598_vm1, %v1073_v6 }
  0x8a   : > { %1649 = vmatmul.msk.f32.gmra.mxu3 %vm598_vm1, %v1081_v7  ;;  %1658 = vmatmul.msk.f32.gmra.mxu0 %vm598_vm1, %v1089_v8 }
  0x8e   : > { %v1986_v9 = vpop.f32.mrf.mxu1 }
  0x8f   : > { %v644_v13 = vpop.f32.mrf.mxu0 }
  0x91   : > { %1632 = vmatmul.msk.f32.gmra.mxu1 %vm598_vm1, %v835_v10  ;;  %1641 = vmatmul.msk.f32.gmra.mxu2 %vm598_vm1, %v1074_v11  ;;  %v2048_v10 = vld [vmem:[%s2116_s7] ss:$0 sm:$0xff] }
  0x92   : > { %1650 = vmatmul.msk.f32.gmra.mxu3 %vm598_vm1, %v1082_v12  ;;  %1659 = vmatmul.msk.f32.gmra.mxu0 %vm598_vm1, %v1090_v14 }
  0x94   : > { %v1996_v15 = vpop.f32.mrf.mxu2 }
  0x95   : > { %v1998_v16 = vpop.f32.mrf.mxu3 }
  0x96   : > { %v2000_v17 = vpop.f32.mrf.mxu1 }
  0x97   : > { %v647_v21 = vpop.f32.mrf.mxu0 }
  0x99   : > { %1633 = vmatmul.msk.f32.gmra.mxu1 %vm598_vm1, %v836_v18  ;;  %1642 = vmatmul.msk.f32.gmra.mxu2 %vm598_vm1, %v1075_v19 }
  0x9a   : > { %1651 = vmatmul.msk.f32.gmra.mxu3 %vm598_vm1, %v1083_v20  ;;  %1660 = vmatmul.msk.f32.gmra.mxu0 %vm598_vm1, %v1091_v22 }
  0x9c   : > { %v2010_v23 = vpop.f32.mrf.mxu2 }
  0x9d   : > { %v2012_v24 = vpop.f32.mrf.mxu3 }
  0x9e   : > { %v712_v25 = vpop.f32.mrf.mxu1 }
  0x9f   : > { %v959_v26 = vpop.f32.mrf.mxu0  ;;  %v713_v54 = vadd.f32 %v712_v25, %v644_v13 }
  0xa4   : > { %v781_v27 = vpop.f32.mrf.mxu2 }
  0xa5   : > { %v882_v28 = vpop.f32.mrf.mxu3  ;;  %v805_v56 = vadd.f32 %v781_v27, %v713_v54 }
  0xa6   : > { %v715_v29 = vpop.f32.mrf.mxu1 }
  0xa7   : > { %v962_v30 = vpop.f32.mrf.mxu0  ;;  %v906_v58 = vadd.f32 %v882_v28, %v805_v56  ;;  %v716_v61 = vadd.f32 %v715_v29, %v647_v21 }
  0xa9   : > { %v983_v63 = vadd.f32 %v959_v26, %v906_v58 }
  0xac   : > { %v784_v31 = vpop.f32.mrf.mxu2 }
  0xad   : > { %v885_v32 = vpop.f32.mrf.mxu3  ;;  %v806_v0 = vadd.f32 %v784_v31, %v716_v61 }
  0xae   : > { %v718_v33 = vpop.f32.mrf.mxu1 }
  0xaf   : > { %v965_v34 = vpop.f32.mrf.mxu0  ;;  %v907_v3 = vadd.f32 %v885_v32, %v806_v0  ;;  %v719_v7 = vadd.f32 %v718_v33, %v1986_v9 }
  0xb1   : > { %v984_v12 = vadd.f32 %v962_v30, %v907_v3 }
  0xb4   : > { %v787_v35 = vpop.f32.mrf.mxu2 }
  0xb5   : > { %v888_v36 = vpop.f32.mrf.mxu3  ;;  %v807_v13 = vadd.f32 %v787_v35, %v719_v7 }
  0xb6   : > { %v721_v37 = vpop.f32.mrf.mxu1 }
  0xb7   : > { %v2014_v38 = vpop.f32.mrf.mxu0  ;;  %v908_v20 = vadd.f32 %v888_v36, %v807_v13  ;;  %v722_v26 = vadd.f32 %v721_v37, %v2000_v17 }
  0xb9   : > { %v985_v29 = vadd.f32 %v965_v34, %v908_v20 }
  0xbc   : > { %v790_v39 = vpop.f32.mrf.mxu2 }
  0xbd   : > { %v891_v40 = vpop.f32.mrf.mxu3  ;;  %v808_v30 = vadd.f32 %v790_v39, %v722_v26 }
  0xbe   : > { %v724_v41 = vpop.f32.mrf.mxu1 }
  0xbf   : > { %v2016_v42 = vpop.f32.mrf.mxu0  ;;  %v909_v54 = vadd.f32 %v891_v40, %v808_v30 }
  0xc1   : > { %v986_v37 = vadd.f32 %v2014_v38, %v909_v54 }
  0xc4   : > { %v793_v43 = vpop.f32.mrf.mxu2 }
  0xc5   : > { %v2018_v44 = vpop.f32.mrf.mxu3 }
  0xc6   : > { %v2020_v45 = vpop.f32.mrf.mxu1 }
  0xc7   : > { %v2022_v46 = vpop.f32.mrf.mxu0 }
  0xcc   : > { %v2024_v47 = vpop.f32.mrf.mxu2 }
  0xcd   : > { %v2026_v48 = vpop.f32.mrf.mxu3 }
  0xce   : > { %v2028_v49 = vpop.f32.mrf.mxu1 }
  0xcf   : > { %v2030_v50 = vpop.f32.mrf.mxu0 }
  0xd4   : > { %v2032_v51 = vpop.f32.mrf.mxu2 }
  0xd5   : > { %v2034_v52 = vpop.f32.mrf.mxu3 }
  0xd6   : > { %v2036_v53 = vpop.f32.mrf.mxu1 }
  0xd7   : > { %v2038_v55 = vpop.f32.mrf.mxu0 }
  0xdc   : > { %v2040_v57 = vpop.f32.mrf.mxu2 }
  0xdd   : > { %v2042_v59 = vpop.f32.mrf.mxu3 }
  0xde   : > { %v1036_v60 = vpop.f32.mrf.mxu1 }
  0xdf   : > { %v1291_v62 = vpop.f32.mrf.mxu0  ;;  %v1060_v1 = vadd.f32 %v1036_v60, %v983_v63  ;;  %v725_v60 = vadd.f32 %v724_v41, %v1996_v15  ;;  %v728_v15 = vadd.f32 %v2020_v45, %v2010_v23  ;;  %v731_v23 = vadd.f32 %v2028_v49, %v1998_v16 }
  0xe0   : > { %v734_v16 = vadd.f32 %v2036_v53, %v2012_v24 }
  0xe1   : > { %v809_v34 = vadd.f32 %v793_v43, %v725_v60  ;;  %v810_v43 = vadd.f32 %v2024_v47, %v728_v15  ;;  %v811_v47 = vadd.f32 %v2032_v51, %v731_v23 }
  0xe2   : > { %v812_v51 = vadd.f32 %v2040_v57, %v734_v16 }
  0xe3   : > { %v910_v40 = vadd.f32 %v2018_v44, %v809_v34  ;;  %v911_v44 = vadd.f32 %v2026_v48, %v810_v43  ;;  %v912_v48 = vadd.f32 %v2034_v52, %v811_v47 }
  0xe4   : > { %v1137_v2 = vpop.f32.mrf.mxu2  ;;  %v913_v30 = vadd.f32 %v2042_v59, %v812_v51 }
  0xe5   : > { %v1161_v4 = vadd.f32 %v1137_v2, %v1060_v1  ;;  %v1214_v5 = vpop.f32.mrf.mxu3  ;;  %v987_v38 = vadd.f32 %v2016_v42, %v910_v40  ;;  %v988_v42 = vadd.f32 %v2022_v46, %v911_v44  ;;  %v989_v49 = vadd.f32 %v2030_v50, %v912_v48 }
  0xe6   : > { %v1039_v6 = vpop.f32.mrf.mxu1  ;;  %v990_v50 = vadd.f32 %v2038_v55, %v913_v30 }
  0xe7   : > { %v1238_v8 = vadd.f32 %v1214_v5, %v1161_v4  ;;  %v1294_v11 = vpop.f32.mrf.mxu0  ;;  %v1061_v18 = vadd.f32 %v1039_v6, %v984_v12 }
  0xe9   : > { %v1315_v14 = vadd.f32 %v1291_v62, %v1238_v8 }
  0xeb   : > { %v1327_v19 = vadd.f32 %v2048_v10, %v1315_v14 }
  0xec   : > { %v1140_v9 = vpop.f32.mrf.mxu2 }
  0xed   : > { %1335 = vst.msk [vmem:[%s2054_s15] sm:$0xff] %vm598_vm1, %v1327_v19  ;;  %v1162_v21 = vadd.f32 %v1140_v9, %v1061_v18  ;;  %v1217_v22 = vpop.f32.mrf.mxu3 }
  0xee   : > { %v1042_v25 = vpop.f32.mrf.mxu1 }
  0xef   : > { %v1239_v27 = vadd.f32 %v1217_v22, %v1162_v21  ;;  %v1297_v28 = vpop.f32.mrf.mxu0  ;;  %v1062_v32 = vadd.f32 %v1042_v25, %v985_v29 }
  0xf1   : > { %v1316_v31 = vadd.f32 %v1294_v11, %v1239_v27 }
  0xf3   : > { %v1328_v33 = vadd.f32 %v2048_v10, %v1316_v31 }
  0xf4   : > { %v1143_v35 = vpop.f32.mrf.mxu2 }
  0xf5   : > { %1336 = vst.msk [vmem:[%s2054_s15 + $0x8] sm:$0xff] %vm598_vm1, %v1328_v33  ;;  %v1163_v36 = vadd.f32 %v1143_v35, %v1062_v32  ;;  %v1220_v56 = vpop.f32.mrf.mxu3 }
  0xf6   : > { %v1045_v58 = vpop.f32.mrf.mxu1 }
  0xf7   : > { %v1240_v61 = vadd.f32 %v1220_v56, %v1163_v36  ;;  %v1300_v17 = vpop.f32.mrf.mxu0  ;;  %v1063_v62 = vadd.f32 %v1045_v58, %v986_v37 }
  0xf9   : > { %v1317_v39 = vadd.f32 %v1297_v28, %v1240_v61 }
  0xfb   : > { %v1329_v63 = vadd.f32 %v2048_v10, %v1317_v39 }
  0xfc   : > { %v1146_v0 = vpop.f32.mrf.mxu2 }
  0xfd   : > { %1337 = vst.msk [vmem:[%s2054_s15 + $0x10] sm:$0xff] %vm598_vm1, %v1329_v63  ;;  %v1164_v1 = vadd.f32 %v1146_v0, %v1063_v62  ;;  %v1223_v2 = vpop.f32.mrf.mxu3 }
  0xfe   : > { %v1048_v3 = vpop.f32.mrf.mxu1 }
  0xff   : > { %v1241_v41 = vadd.f32 %v1223_v2, %v1164_v1  ;;  %v1303_v4 = vpop.f32.mrf.mxu0  ;;  %v1064_v6 = vadd.f32 %v1048_v3, %v987_v38 }
 0x101   : > { %v1318_v5 = vadd.f32 %v1300_v17, %v1241_v41 }
 0x103   : > { %v1330_v7 = vadd.f32 %v2048_v10, %v1318_v5 }
 0x104   : > { %v1149_v8 = vpop.f32.mrf.mxu2 }
 0x105   : > { %1338 = vst.msk [vmem:[%s2054_s15 + $0x18] sm:$0xff] %vm598_vm1, %v1330_v7  ;;  %v1165_v11 = vadd.f32 %v1149_v8, %v1064_v6  ;;  %v1226_v12 = vpop.f32.mrf.mxu3 }
 0x106   : > { %v1051_v13 = vpop.f32.mrf.mxu1 }
 0x107   : > { %v1242_v45 = vadd.f32 %v1226_v12, %v1165_v11  ;;  %v1306_v18 = vpop.f32.mrf.mxu0  ;;  %v1065_v19 = vadd.f32 %v1051_v13, %v988_v42 }
 0x109   : > { %v1319_v14 = vadd.f32 %v1303_v4, %v1242_v45 }
 0x10b   : > { %v1331_v9 = vadd.f32 %v2048_v10, %v1319_v14 }
 0x10c   : > { %v1152_v20 = vpop.f32.mrf.mxu2 }
 0x10d   : > { %1339 = vst.msk [vmem:[%s2054_s15 + $0x20] sm:$0xff] %vm598_vm1, %v1331_v9  ;;  %v1166_v21 = vadd.f32 %v1152_v20, %v1065_v19  ;;  %v1229_v22 = vpop.f32.mrf.mxu3 }
 0x10e   : > { %v1054_v25 = vpop.f32.mrf.mxu1 }
 0x10f   : > { %v1243_v46 = vadd.f32 %v1229_v22, %v1166_v21  ;;  %v1066_v27 = vadd.f32 %v1054_v25, %v989_v49  ;;  %v1309_v52 = vpop.f32.mrf.mxu0 }
 0x111   : > { %v1320_v26 = vadd.f32 %v1306_v18, %v1243_v46 }
 0x113   : > { %v1332_v28 = vadd.f32 %v2048_v10, %v1320_v26 }
 0x114   : > { %v1155_v29 = vpop.f32.mrf.mxu2 }
 0x115   : > { %1340 = vst.msk [vmem:[%s2054_s15 + $0x28] sm:$0xff] %vm598_vm1, %v1332_v28  ;;  %v1167_v31 = vadd.f32 %v1155_v29, %v1066_v27  ;;  %v1232_v32 = vpop.f32.mrf.mxu3 }
 0x116   : > { %v1057_v53 = vpop.f32.mrf.mxu1 }
 0x117   : > { %v1244_v24 = vadd.f32 %v1232_v32, %v1167_v31  ;;  %v1067_v57 = vadd.f32 %v1057_v53, %v990_v50  ;;  %v1312_v58 = vpop.f32.mrf.mxu0 }
 0x119   : > { %v1321_v33 = vadd.f32 %v1309_v52, %v1244_v24 }
 0x11b   : > { %v1333_v35 = vadd.f32 %v2048_v10, %v1321_v33 }
 0x11c   : > { %v1158_v54 = vpop.f32.mrf.mxu2 }
 0x11d   : > { %1341 = vst.msk [vmem:[%s2054_s15 + $0x30] sm:$0xff] %vm598_vm1, %v1333_v35  ;;  %v1168_v36 = vadd.f32 %v1158_v54, %v1067_v57  ;;  %v1235_v56 = vpop.f32.mrf.mxu3 }
 0x11f   : > { %v1245_v59 = vadd.f32 %v1235_v56, %v1168_v36 }
 0x121   : > { %v1322_v60 = vadd.f32 %v1312_v58, %v1245_v59 }
 0x123   : > { %v1334_v61 = vadd.f32 %v2048_v10, %v1322_v60 }
 0x125   : > { %1342 = vst.msk [vmem:[%s2054_s15 + $0x38] sm:$0xff] %vm598_vm1, %v1334_v61 }
 0x126 PF: > { %s18_s29 = sadd.s32 1, %s1720_s29   ;;  %s2118_s27 = smov %s1716_s28 }
 0x127   : > { %p15_p5 = scmp.ge.s32.totalorder %s18_s29, 4   ;;  %s2119_s28 = smov %s2121_s30 }
 0x129   :  { %17 = sbr.rel (!%p15_p5) target bundleno = 2 (0x2), region = 103 }

// kernel: tpu_custom_call.1
= control target key start
LH: loop header
LB: loop body
LE: loop exit
PB: predicated region body
PF: predicated region fallthrough
CT: control target
= control target key end

     0   :  { %s1767_s27 = smov 0   ;;  %s1769_s28 = smov 0   ;;  %s2109_s0 = inlined_call_operand.vmem [shape: f32[2,8,9,4], index: 0, kind: input, shape index: {}]   ;;  %s2110_s1 = inlined_call_operand.vmem [shape: f32[2,8,9,4], index: 1, kind: input, shape index: {}]   ;;  %s2111_s2 = inlined_call_operand.vmem [shape: f32[2,8,9,4], index: 2, kind: input, shape index: {}]   ;;  %s2112_s3 = inlined_call_operand.vmem [shape: f32[2,8,8,4], index: 3, kind: input, shape index: {}]   ;;  %s2113_s4 = inlined_call_operand.vmem [shape: f32[2,8,8,4], index: 4, kind: input, shape index: {}]   ;;  %s2114_s5 = inlined_call_operand.vmem [shape: f32[2,8,8,4], index: 5, kind: input, shape index: {}]   ;;  %s2115_s6 = inlined_call_operand.vmem [shape: f32[36,4], index: 6, kind: input, shape index: {}]   ;;  %s2116_s7 = inlined_call_operand.vmem [shape: f32[1,4], index: 7, kind: input, shape index: {}]   ;;  %s2117_s8 = inlined_call_operand.vmem [shape: f32[2,8,8,4], index: 8, kind: output, shape index: {}]  }
   0x1   :  { %s1771_s29 = smov 0  }
   0x2 LB: > { %s37_s30 = sadd.s32 1, %s1716_s28  ;;  %p1565_p0 = scmp.ge.s32.totalorder %s1720_s29, 1  ;;  %s1720_s29 = sphi %s1771_s29, %s18_s29   ;;  %s1716_s28 = sphi %s1769_s28, %s2119_s28   ;;  %s1712_s27 = sphi %s1767_s27, %s2118_s27  }
   0x3   : > { %p39_p1 = scmp.ge.s32.totalorder %s37_s30, 2  ;;  %p395_p2 = scmp.lt.s32.totalorder %s1720_s29, 3 }
   0x5   : > { %s2121_s30 = smov (%p39_p1, %s37_s30), 0  ;;  %p396_p3 = pnand %p1565_p0, %p395_p2 }
   0x6   : > { %p493_p4 = scmp.lt.s32.totalorder (!%p396_p3), %s1712_s27, 1 }
   0x7   : > { %399 = sbr.rel (%p396_p3) target bundleno = 294 (0x126), region = 52 }
   0xc   : > { %v597_v0 = vld [vmem:[%s2115_s6 + $0x4] sm:$0xf]  ;;  %vm623_vm0 = vcmask 1043456   ;;  %v736_v1 = vld [vmem:[%s2115_s6 + $0x8] sm:$0xf]  ;;  %s2123_s27 = smov (!%p493_p4, %s1712_s27), 1 }
   0xd   : > { %1670 = vmatpush.msk.msra.mxu1 %vm623_vm0, %v597_v0  ;;  %1671 = vmatpush.msk.msra.mxu2 %vm623_vm0, %v597_v0  ;;  %v837_v2 = vld [vmem:[%s2115_s6 + $0xc] sm:$0xf]  ;;  %v596_v3 = vld [vmem:[%s2115_s6] sm:$0xf]  ;;  %v914_v4 = vld [vmem:[%s2115_s6 + $0x10] sm:$0xf] }
   0xe   : > { %1672 = vmatpush.msk.msra.mxu3 %vm623_vm0, %v597_v0  ;;  %s1809_s19 = sshll.u32 %s2123_s27, 6  ;;  %1580 = vmatpush.msk.msra.mxu0 %vm623_vm0, %v597_v0  ;;  %vm598_vm1 = vcmask 31744   ;;  %v1092_v5 = vld [vmem:[%s2115_s6 + $0x18] sm:$0xf]  ;;  %v1169_v6 = vld [vmem:[%s2115_s6 + $0x1c] sm:$0xf] }
   0xf   : > { %1598 = vmatpush.msk.msrb.mxu2 %vm623_vm0, %v736_v1  ;;  %1589 = vmatpush.msk.msrb.mxu1 %vm623_vm0, %v596_v3  ;;  %s533_s22 = scalar_lea.vmem %s2112_s3, %s1809_s19  ;;  %v991_v11 = vld [vmem:[%s2115_s6 + $0x14] sm:$0xf]  ;;  %v1246_v12 = vld [vmem:[%s2115_s6 + $0x20] sm:$0xf]  ;;  %s1838_s13 = sshll.u32 %s2123_s27, 7 }
  0x10   : > { %1607 = vmatpush.msk.msrb.mxu3 %vm623_vm0, %v837_v2  ;;  %1616 = vmatpush.msk.msrb.mxu0 %vm623_vm0, %v914_v4  ;;  %v582_v7 = vld [vmem:[%s533_s22 + $0x10] sm:$0xff]  ;;  %v584_v8 = vld [vmem:[%s533_s22 + $0x20] sm:$0xff]  ;;  %v583_v13 = vld [vmem:[%s533_s22 + $0x18] sm:$0xff]  ;;  %s1848_s16 = scalar_lea.vmem %s2109_s0, %s1838_s13  ;;  %s1854_s27 = scalar_lea.vmem %s2110_s1, %s1838_s13 }
  0x11   : > { %v586_v9 = vld [vmem:[%s533_s22 + $0x30] sm:$0xff]  ;;  %1583 = vmatmul.msk.f32.vlgmr.msra.gmra.mxu1 %vm598_vm1, %v582_v7  ;;  %1585 = vmatmul.msk.f32.vlgmr.msra.gmra.mxu2 %vm598_vm1, %v584_v8  ;;  %v580_v10 = vld [vmem:[%s533_s22] sm:$0xff]  ;;  %v585_v14 = vld [vmem:[%s533_s22 + $0x28] sm:$0xff]  ;;  %s1930_s25 = scalar_lea.vmem %s2111_s2, %s1838_s13  ;;  %s1936_s10 = scalar_lea.vmem %s2114_s5, %s1809_s19 }
  0x12   : > { %1587 = vmatmul.msk.f32.vlgmr.msra.gmra.mxu3 %vm598_vm1, %v586_v9  ;;  %1581 = vmatmul.msk.f32.vlgmr.msra.gmra.mxu0 %vm598_vm1, %v580_v10  ;;  %v587_v15 = vld [vmem:[%s533_s22 + $0x38] sm:$0xff]  ;;  %v581_v16 = vld [vmem:[%s533_s22 + $0x8] sm:$0xff]  ;;  %s1860_s22 = scalar_lea.vmem %s2113_s4, %s1809_s19  ;;  %v572_v17 = vld [vmem:[%s1848_s16] sm:$0xff]  ;;  %s2054_s15 = scalar_lea.vmem %s2117_s8, %s1809_s19 }
  0x13   : > { %1634 = vmatpush.msk.msra.mxu2 %vm623_vm0, %v1092_v5  ;;  %1643 = vmatpush.msk.msra.mxu3 %vm623_vm0, %v1169_v6  ;;  %v588_v18 = vld [vmem:[%s1848_s16 + $0x1] sm:$0xff]  ;;  %v573_v21 = vld [vmem:[%s1848_s16 + $0x10] sm:$0xff]  ;;  %v824_v32 = vld [vmem:[%s1860_s22 + $0x18] sm:$0xff] }
  0x14   : > { %1625 = vmatpush.msk.msra.mxu1 %vm623_vm0, %v991_v11  ;;  %1652 = vmatpush.msk.msra.mxu0 %vm623_vm0, %v1246_v12  ;;  %v813_v19 = vld [vmem:[%s1854_s27] sm:$0xff]  ;;  %v589_v22 = vld [vmem:[%s1848_s16 + $0x11] sm:$0xff]  ;;  %v822_v24 = vld [vmem:[%s1860_s22 + $0x8] sm:$0xff] }
  0x15   : > { %v821_v20 = vld [vmem:[%s1860_s22] sm:$0xff]  ;;  %v814_v23 = vld [vmem:[%s1854_s27 + $0x10] sm:$0xff]  ;;  %v826_v40 = vld [vmem:[%s1860_s22 + $0x28] sm:$0xff] }
  0x16   : > { %v574_v25 = vld [vmem:[%s1848_s16 + $0x20] sm:$0xff]  ;;  %v823_v28 = vld [vmem:[%s1860_s22 + $0x10] sm:$0xff]  ;;  %v828_v48 = vld [vmem:[%s1860_s22 + $0x38] sm:$0xff] }
  0x17   : > { %v590_v26 = vld [vmem:[%s1848_s16 + $0x21] sm:$0xff]  ;;  %v575_v29 = vld [vmem:[%s1848_s16 + $0x30] sm:$0xff]  ;;  %v1079_v63 = vld [vmem:[%s1936_s10 + $0x18] sm:$0xff] }
  0x18   : > { %v815_v27 = vld [vmem:[%s1854_s27 + $0x20] sm:$0xff]  ;;  %v591_v30 = vld [vmem:[%s1848_s16 + $0x31] sm:$0xff]  ;;  %v1077_v55 = vld [vmem:[%s1936_s10 + $0x8] sm:$0xff] }
  0x19   : > { %1584 = vmatmul.msk.f32.gmra.mxu1 %vm598_vm1, %v583_v13  ;;  %1586 = vmatmul.msk.f32.gmra.mxu2 %vm598_vm1, %v585_v14  ;;  %v816_v31 = vld [vmem:[%s1854_s27 + $0x30] sm:$0xff]  ;;  %v576_v33 = vld [vmem:[%s1848_s16 + $0x40] sm:$0xff]  ;;  %v1081_v7 = vld [vmem:[%s1936_s10 + $0x28] sm:$0xff] }
  0x1a   : > { %1588 = vmatmul.msk.f32.gmra.mxu3 %vm598_vm1, %v587_v15  ;;  %1582 = vmatmul.msk.f32.gmra.mxu0 %vm598_vm1, %v581_v16  ;;  %v592_v34 = vld [vmem:[%s1848_s16 + $0x41] sm:$0xff]  ;;  %v577_v37 = vld [vmem:[%s1848_s16 + $0x50] sm:$0xff] }
  0x1b   : > { %v817_v35 = vld [vmem:[%s1854_s27 + $0x40] sm:$0xff]  ;;  %v593_v38 = vld [vmem:[%s1848_s16 + $0x51] sm:$0xff] }
  0x1c   : > { %v825_v36 = vld [vmem:[%s1860_s22 + $0x20] sm:$0xff]  ;;  %v818_v39 = vld [vmem:[%s1854_s27 + $0x50] sm:$0xff] }
  0x1d   : > { %v578_v41 = vld [vmem:[%s1848_s16 + $0x60] sm:$0xff]  ;;  %v827_v44 = vld [vmem:[%s1860_s22 + $0x30] sm:$0xff] }
  0x1e   : > { %v594_v42 = vld [vmem:[%s1848_s16 + $0x61] sm:$0xff]  ;;  %v579_v45 = vld [vmem:[%s1848_s16 + $0x70] sm:$0xff] }
  0x1f   : > { %v819_v43 = vld [vmem:[%s1854_s27 + $0x60] sm:$0xff]  ;;  %v595_v46 = vld [vmem:[%s1848_s16 + $0x71] sm:$0xff] }
  0x20   : > { %v820_v47 = vld [vmem:[%s1854_s27 + $0x70] sm:$0xff]  ;;  %v829_v49 = vld [vmem:[%s1854_s27 + $0x1] sm:$0xff] }
  0x21   : > { %1590 = vmatmul.msk.f32.vlgmr.msrb.gmra.mxu1 %vm598_vm1, %v572_v17  ;;  %1599 = vmatmul.msk.f32.vlgmr.msrb.gmra.mxu2 %vm598_vm1, %v588_v18  ;;  %v1068_v50 = vld [vmem:[%s1930_s25] sm:$0xff]  ;;  %v830_v53 = vld [vmem:[%s1854_s27 + $0x11] sm:$0xff] }
  0x22   : > { %1608 = vmatmul.msk.f32.vlgmr.msrb.gmra.mxu3 %vm598_vm1, %v813_v19  ;;  %1617 = vmatmul.msk.f32.vlgmr.msrb.gmra.mxu0 %vm598_vm1, %v821_v20  ;;  %v1076_v51 = vld [vmem:[%s1936_s10] sm:$0xff]  ;;  %v1069_v54 = vld [vmem:[%s1930_s25 + $0x10] sm:$0xff]  ;;  %v1083_v20 = vld [vmem:[%s1936_s10 + $0x38] sm:$0xff] }
  0x23   : > { %v1084_v52 = vld [vmem:[%s1930_s25 + $0x1] sm:$0xff]  ;;  %v1085_v56 = vld [vmem:[%s1930_s25 + $0x11] sm:$0xff] }
  0x24   : > { %v831_v57 = vld [vmem:[%s1854_s27 + $0x21] sm:$0xff]  ;;  %v1078_v59 = vld [vmem:[%s1936_s10 + $0x10] sm:$0xff] }
  0x25   : > { %v1070_v58 = vld [vmem:[%s1930_s25 + $0x20] sm:$0xff]  ;;  %v832_v61 = vld [vmem:[%s1854_s27 + $0x31] sm:$0xff] }
  0x26   : > { %v1086_v60 = vld [vmem:[%s1930_s25 + $0x21] sm:$0xff]  ;;  %v1071_v62 = vld [vmem:[%s1930_s25 + $0x30] sm:$0xff] }
  0x27   : > { %v1087_v0 = vld [vmem:[%s1930_s25 + $0x31] sm:$0xff]  ;;  %v833_v1 = vld [vmem:[%s1854_s27 + $0x41] sm:$0xff] }
  0x28   : > { %v1072_v2 = vld [vmem:[%s1930_s25 + $0x40] sm:$0xff]  ;;  %v834_v5 = vld [vmem:[%s1854_s27 + $0x51] sm:$0xff] }
  0x29   : > { %1591 = vmatmul.msk.f32.gmra.mxu1 %vm598_vm1, %v573_v21  ;;  %1600 = vmatmul.msk.f32.gmra.mxu2 %vm598_vm1, %v589_v22  ;;  %v1080_v3 = vld [vmem:[%s1936_s10 + $0x20] sm:$0xff]  ;;  %v1073_v6 = vld [vmem:[%s1930_s25 + $0x50] sm:$0xff] }
  0x2a   : > { %1609 = vmatmul.msk.f32.gmra.mxu3 %vm598_vm1, %v814_v23  ;;  %1618 = vmatmul.msk.f32.gmra.mxu0 %vm598_vm1, %v822_v24  ;;  %v1088_v4 = vld [vmem:[%s1930_s25 + $0x41] sm:$0xff]  ;;  %v1089_v8 = vld [vmem:[%s1930_s25 + $0x51] sm:$0xff] }
  0x2b   : > { %v835_v10 = vld [vmem:[%s1854_s27 + $0x61] sm:$0xff]  ;;  %v1082_v12 = vld [vmem:[%s1936_s10 + $0x30] sm:$0xff] }
  0x2c   : > { %v1074_v11 = vld [vmem:[%s1930_s25 + $0x60] sm:$0xff]  ;;  %v836_v18 = vld [vmem:[%s1854_s27 + $0x71] sm:$0xff] }
  0x2d   : > { %v1090_v14 = vld [vmem:[%s1930_s25 + $0x61] sm:$0xff]  ;;  %v1075_v19 = vld [vmem:[%s1930_s25 + $0x70] sm:$0xff] }
  0x2e   : > { %v1091_v22 = vld [vmem:[%s1930_s25 + $0x71] sm:$0xff] }
  0x31   : > { %1592 = vmatmul.msk.f32.gmra.mxu1 %vm598_vm1, %v574_v25  ;;  %1601 = vmatmul.msk.f32.gmra.mxu2 %vm598_vm1, %v590_v26 }
  0x32   : > { %1610 = vmatmul.msk.f32.gmra.mxu3 %vm598_vm1, %v815_v27  ;;  %1619 = vmatmul.msk.f32.gmra.mxu0 %vm598_vm1, %v823_v28 }
  0x39   : > { %1593 = vmatmul.msk.f32.gmra.mxu1 %vm598_vm1, %v575_v29  ;;  %1602 = vmatmul.msk.f32.gmra.mxu2 %vm598_vm1, %v591_v30 }
  0x3a   : > { %1611 = vmatmul.msk.f32.gmra.mxu3 %vm598_vm1, %v816_v31  ;;  %1620 = vmatmul.msk.f32.gmra.mxu0 %vm598_vm1, %v824_v32 }
  0x41   : > { %1594 = vmatmul.msk.f32.gmra.mxu1 %vm598_vm1, %v576_v33  ;;  %1603 = vmatmul.msk.f32.gmra.mxu2 %vm598_vm1, %v592_v34 }
  0x42   : > { %1612 = vmatmul.msk.f32.gmra.mxu3 %vm598_vm1, %v817_v35  ;;  %1621 = vmatmul.msk.f32.gmra.mxu0 %vm598_vm1, %v825_v36 }
  0x49   : > { %1595 = vmatmul.msk.f32.gmra.mxu1 %vm598_vm1, %v577_v37  ;;  %1604 = vmatmul.msk.f32.gmra.mxu2 %vm598_vm1, %v593_v38 }
  0x4a   : > { %1613 = vmatmul.msk.f32.gmra.mxu3 %vm598_vm1, %v818_v39  ;;  %1622 = vmatmul.msk.f32.gmra.mxu0 %vm598_vm1, %v826_v40 }
  0x51   : > { %1596 = vmatmul.msk.f32.gmra.mxu1 %vm598_vm1, %v578_v41  ;;  %1605 = vmatmul.msk.f32.gmra.mxu2 %vm598_vm1, %v594_v42 }
  0x52   : > { %1614 = vmatmul.msk.f32.gmra.mxu3 %vm598_vm1, %v819_v43  ;;  %1623 = vmatmul.msk.f32.gmra.mxu0 %vm598_vm1, %v827_v44 }
  0x59   : > { %1597 = vmatmul.msk.f32.gmra.mxu1 %vm598_vm1, %v579_v45  ;;  %1606 = vmatmul.msk.f32.gmra.mxu2 %vm598_vm1, %v595_v46 }
  0x5a   : > { %1615 = vmatmul.msk.f32.gmra.mxu3 %vm598_vm1, %v820_v47  ;;  %1624 = vmatmul.msk.f32.gmra.mxu0 %vm598_vm1, %v828_v48 }
  0x61   : > { %1626 = vmatmul.msk.f32.vlgmr.msra.gmra.mxu1 %vm598_vm1, %v829_v49  ;;  %1635 = vmatmul.msk.f32.vlgmr.msra.gmra.mxu2 %vm598_vm1, %v1068_v50 }
  0x62   : > { %1644 = vmatmul.msk.f32.vlgmr.msra.gmra.mxu3 %vm598_vm1, %v1076_v51  ;;  %1653 = vmatmul.msk.f32.vlgmr.msra.gmra.mxu0 %vm598_vm1, %v1084_v52 }
  0x69   : > { %1627 = vmatmul.msk.f32.gmra.mxu1 %vm598_vm1, %v830_v53  ;;  %1636 = vmatmul.msk.f32.gmra.mxu2 %vm598_vm1, %v1069_v54 }
  0x6a   : > { %1645 = vmatmul.msk.f32.gmra.mxu3 %vm598_vm1, %v1077_v55  ;;  %1654 = vmatmul.msk.f32.gmra.mxu0 %vm598_vm1, %v1085_v56 }
  0x71   : > { %1628 = vmatmul.msk.f32.gmra.mxu1 %vm598_vm1, %v831_v57  ;;  %1637 = vmatmul.msk.f32.gmra.mxu2 %vm598_vm1, %v1070_v58 }
  0x72   : > { %1646 = vmatmul.msk.f32.gmra.mxu3 %vm598_vm1, %v1078_v59  ;;  %1655 = vmatmul.msk.f32.gmra.mxu0 %vm598_vm1, %v1086_v60 }
  0x79   : > { %1629 = vmatmul.msk.f32.gmra.mxu1 %vm598_vm1, %v832_v61  ;;  %1638 = vmatmul.msk.f32.gmra.mxu2 %vm598_vm1, %v1071_v62 }
  0x7a   : > { %1647 = vmatmul.msk.f32.gmra.mxu3 %vm598_vm1, %v1079_v63  ;;  %1656 = vmatmul.msk.f32.gmra.mxu0 %vm598_vm1, %v1087_v0 }
  0x81   : > { %1630 = vmatmul.msk.f32.gmra.mxu1 %vm598_vm1, %v833_v1  ;;  %1639 = vmatmul.msk.f32.gmra.mxu2 %vm598_vm1, %v1072_v2 }
  0x82   : > { %1648 = vmatmul.msk.f32.gmra.mxu3 %vm598_vm1, %v1080_v3  ;;  %1657 = vmatmul.msk.f32.gmra.mxu0 %vm598_vm1, %v1088_v4 }
  0x89   : > { %1631 = vmatmul.msk.f32.gmra.mxu1 %vm598_vm1, %v834_v5  ;;  %1640 = vmatmul.msk.f32.gmra.mxu2 %vm598_vm1, %v1073_v6 }
  0x8a   : > { %1649 = vmatmul.msk.f32.gmra.mxu3 %vm598_vm1, %v1081_v7  ;;  %1658 = vmatmul.msk.f32.gmra.mxu0 %vm598_vm1, %v1089_v8 }
  0x8e   : > { %v1986_v9 = vpop.f32.mrf.mxu1 }
  0x8f   : > { %v644_v13 = vpop.f32.mrf.mxu0 }
  0x91   : > { %1632 = vmatmul.msk.f32.gmra.mxu1 %vm598_vm1, %v835_v10  ;;  %1641 = vmatmul.msk.f32.gmra.mxu2 %vm598_vm1, %v1074_v11  ;;  %v2048_v10 = vld [vmem:[%s2116_s7] ss:$0 sm:$0xff] }
  0x92   : > { %1650 = vmatmul.msk.f32.gmra.mxu3 %vm598_vm1, %v1082_v12  ;;  %1659 = vmatmul.msk.f32.gmra.mxu0 %vm598_vm1, %v1090_v14 }
  0x94   : > { %v1996_v15 = vpop.f32.mrf.mxu2 }
  0x95   : > { %v1998_v16 = vpop.f32.mrf.mxu3 }
  0x96   : > { %v2000_v17 = vpop.f32.mrf.mxu1 }
  0x97   : > { %v647_v21 = vpop.f32.mrf.mxu0 }
  0x99   : > { %1633 = vmatmul.msk.f32.gmra.mxu1 %vm598_vm1, %v836_v18  ;;  %1642 = vmatmul.msk.f32.gmra.mxu2 %vm598_vm1, %v1075_v19 }
  0x9a   : > { %1651 = vmatmul.msk.f32.gmra.mxu3 %vm598_vm1, %v1083_v20  ;;  %1660 = vmatmul.msk.f32.gmra.mxu0 %vm598_vm1, %v1091_v22 }
  0x9c   : > { %v2010_v23 = vpop.f32.mrf.mxu2 }
  0x9d   : > { %v2012_v24 = vpop.f32.mrf.mxu3 }
  0x9e   : > { %v712_v25 = vpop.f32.mrf.mxu1 }
  0x9f   : > { %v959_v26 = vpop.f32.mrf.mxu0  ;;  %v713_v54 = vadd.f32 %v712_v25, %v644_v13 }
  0xa4   : > { %v781_v27 = vpop.f32.mrf.mxu2 }
  0xa5   : > { %v882_v28 = vpop.f32.mrf.mxu3  ;;  %v805_v56 = vadd.f32 %v781_v27, %v713_v54 }
  0xa6   : > { %v715_v29 = vpop.f32.mrf.mxu1 }
  0xa7   : > { %v962_v30 = vpop.f32.mrf.mxu0  ;;  %v906_v58 = vadd.f32 %v882_v28, %v805_v56  ;;  %v716_v61 = vadd.f32 %v715_v29, %v647_v21 }
  0xa9   : > { %v983_v63 = vadd.f32 %v959_v26, %v906_v58 }
  0xac   : > { %v784_v31 = vpop.f32.mrf.mxu2 }
  0xad   : > { %v885_v32 = vpop.f32.mrf.mxu3  ;;  %v806_v0 = vadd.f32 %v784_v31, %v716_v61 }
  0xae   : > { %v718_v33 = vpop.f32.mrf.mxu1 }
  0xaf   : > { %v965_v34 = vpop.f32.mrf.mxu0  ;;  %v907_v3 = vadd.f32 %v885_v32, %v806_v0  ;;  %v719_v7 = vadd.f32 %v718_v33, %v1986_v9 }
  0xb1   : > { %v984_v12 = vadd.f32 %v962_v30, %v907_v3 }
  0xb4   : > { %v787_v35 = vpop.f32.mrf.mxu2 }
  0xb5   : > { %v888_v36 = vpop.f32.mrf.mxu3  ;;  %v807_v13 = vadd.f32 %v787_v35, %v719_v7 }
  0xb6   : > { %v721_v37 = vpop.f32.mrf.mxu1 }
  0xb7   : > { %v2014_v38 = vpop.f32.mrf.mxu0  ;;  %v908_v20 = vadd.f32 %v888_v36, %v807_v13  ;;  %v722_v26 = vadd.f32 %v721_v37, %v2000_v17 }
  0xb9   : > { %v985_v29 = vadd.f32 %v965_v34, %v908_v20 }
  0xbc   : > { %v790_v39 = vpop.f32.mrf.mxu2 }
  0xbd   : > { %v891_v40 = vpop.f32.mrf.mxu3  ;;  %v808_v30 = vadd.f32 %v790_v39, %v722_v26 }
  0xbe   : > { %v724_v41 = vpop.f32.mrf.mxu1 }
  0xbf   : > { %v2016_v42 = vpop.f32.mrf.mxu0  ;;  %v909_v54 = vadd.f32 %v891_v40, %v808_v30 }
  0xc1   : > { %v986_v37 = vadd.f32 %v2014_v38, %v909_v54 }
  0xc4   : > { %v793_v43 = vpop.f32.mrf.mxu2 }
  0xc5   : > { %v2018_v44 = vpop.f32.mrf.mxu3 }
  0xc6   : > { %v2020_v45 = vpop.f32.mrf.mxu1 }
  0xc7   : > { %v2022_v46 = vpop.f32.mrf.mxu0 }
  0xcc   : > { %v2024_v47 = vpop.f32.mrf.mxu2 }
  0xcd   : > { %v2026_v48 = vpop.f32.mrf.mxu3 }
  0xce   : > { %v2028_v49 = vpop.f32.mrf.mxu1 }
  0xcf   : > { %v2030_v50 = vpop.f32.mrf.mxu0 }
  0xd4   : > { %v2032_v51 = vpop.f32.mrf.mxu2 }
  0xd5   : > { %v2034_v52 = vpop.f32.mrf.mxu3 }
  0xd6   : > { %v2036_v53 = vpop.f32.mrf.mxu1 }
  0xd7   : > { %v2038_v55 = vpop.f32.mrf.mxu0 }
  0xdc   : > { %v2040_v57 = vpop.f32.mrf.mxu2 }
  0xdd   : > { %v2042_v59 = vpop.f32.mrf.mxu3 }
  0xde   : > { %v1036_v60 = vpop.f32.mrf.mxu1 }
  0xdf   : > { %v1291_v62 = vpop.f32.mrf.mxu0  ;;  %v1060_v1 = vadd.f32 %v1036_v60, %v983_v63  ;;  %v725_v60 = vadd.f32 %v724_v41, %v1996_v15  ;;  %v728_v15 = vadd.f32 %v2020_v45, %v2010_v23  ;;  %v731_v23 = vadd.f32 %v2028_v49, %v1998_v16 }
  0xe0   : > { %v734_v16 = vadd.f32 %v2036_v53, %v2012_v24 }
  0xe1   : > { %v809_v34 = vadd.f32 %v793_v43, %v725_v60  ;;  %v810_v43 = vadd.f32 %v2024_v47, %v728_v15  ;;  %v811_v47 = vadd.f32 %v2032_v51, %v731_v23 }
  0xe2   : > { %v812_v51 = vadd.f32 %v2040_v57, %v734_v16 }
  0xe3   : > { %v910_v40 = vadd.f32 %v2018_v44, %v809_v34  ;;  %v911_v44 = vadd.f32 %v2026_v48, %v810_v43  ;;  %v912_v48 = vadd.f32 %v2034_v52, %v811_v47 }
  0xe4   : > { %v1137_v2 = vpop.f32.mrf.mxu2  ;;  %v913_v30 = vadd.f32 %v2042_v59, %v812_v51 }
  0xe5   : > { %v1161_v4 = vadd.f32 %v1137_v2, %v1060_v1  ;;  %v1214_v5 = vpop.f32.mrf.mxu3  ;;  %v987_v38 = vadd.f32 %v2016_v42, %v910_v40  ;;  %v988_v42 = vadd.f32 %v2022_v46, %v911_v44  ;;  %v989_v49 = vadd.f32 %v2030_v50, %v912_v48 }
  0xe6   : > { %v1039_v6 = vpop.f32.mrf.mxu1  ;;  %v990_v50 = vadd.f32 %v2038_v55, %v913_v30 }
  0xe7   : > { %v1238_v8 = vadd.f32 %v1214_v5, %v1161_v4  ;;  %v1294_v11 = vpop.f32.mrf.mxu0  ;;  %v1061_v18 = vadd.f32 %v1039_v6, %v984_v12 }
  0xe9   : > { %v1315_v14 = vadd.f32 %v1291_v62, %v1238_v8 }
  0xeb   : > { %v1327_v19 = vadd.f32 %v2048_v10, %v1315_v14 }
  0xec   : > { %v1140_v9 = vpop.f32.mrf.mxu2 }
  0xed   : > { %1335 = vst.msk [vmem:[%s2054_s15] sm:$0xff] %vm598_vm1, %v1327_v19  ;;  %v1162_v21 = vadd.f32 %v1140_v9, %v1061_v18  ;;  %v1217_v22 = vpop.f32.mrf.mxu3 }
  0xee   : > { %v1042_v25 = vpop.f32.mrf.mxu1 }
  0xef   : > { %v1239_v27 = vadd.f32 %v1217_v22, %v1162_v21  ;;  %v1297_v28 = vpop.f32.mrf.mxu0  ;;  %v1062_v32 = vadd.f32 %v1042_v25, %v985_v29 }
  0xf1   : > { %v1316_v31 = vadd.f32 %v1294_v11, %v1239_v27 }
  0xf3   : > { %v1328_v33 = vadd.f32 %v2048_v10, %v1316_v31 }
  0xf4   : > { %v1143_v35 = vpop.f32.mrf.mxu2 }
  0xf5   : > { %1336 = vst.msk [vmem:[%s2054_s15 + $0x8] sm:$0xff] %vm598_vm1, %v1328_v33  ;;  %v1163_v36 = vadd.f32 %v1143_v35, %v1062_v32  ;;  %v1220_v56 = vpop.f32.mrf.mxu3 }
  0xf6   : > { %v1045_v58 = vpop.f32.mrf.mxu1 }
  0xf7   : > { %v1240_v61 = vadd.f32 %v1220_v56, %v1163_v36  ;;  %v1300_v17 = vpop.f32.mrf.mxu0  ;;  %v1063_v62 = vadd.f32 %v1045_v58, %v986_v37 }
  0xf9   : > { %v1317_v39 = vadd.f32 %v1297_v28, %v1240_v61 }
  0xfb   : > { %v1329_v63 = vadd.f32 %v2048_v10, %v1317_v39 }
  0xfc   : > { %v1146_v0 = vpop.f32.mrf.mxu2 }
  0xfd   : > { %1337 = vst.msk [vmem:[%s2054_s15 + $0x10] sm:$0xff] %vm598_vm1, %v1329_v63  ;;  %v1164_v1 = vadd.f32 %v1146_v0, %v1063_v62  ;;  %v1223_v2 = vpop.f32.mrf.mxu3 }
  0xfe   : > { %v1048_v3 = vpop.f32.mrf.mxu1 }
  0xff   : > { %v1241_v41 = vadd.f32 %v1223_v2, %v1164_v1  ;;  %v1303_v4 = vpop.f32.mrf.mxu0  ;;  %v1064_v6 = vadd.f32 %v1048_v3, %v987_v38 }
 0x101   : > { %v1318_v5 = vadd.f32 %v1300_v17, %v1241_v41 }
 0x103   : > { %v1330_v7 = vadd.f32 %v2048_v10, %v1318_v5 }
 0x104   : > { %v1149_v8 = vpop.f32.mrf.mxu2 }
 0x105   : > { %1338 = vst.msk [vmem:[%s2054_s15 + $0x18] sm:$0xff] %vm598_vm1, %v1330_v7  ;;  %v1165_v11 = vadd.f32 %v1149_v8, %v1064_v6  ;;  %v1226_v12 = vpop.f32.mrf.mxu3 }
 0x106   : > { %v1051_v13 = vpop.f32.mrf.mxu1 }
 0x107   : > { %v1242_v45 = vadd.f32 %v1226_v12, %v1165_v11  ;;  %v1306_v18 = vpop.f32.mrf.mxu0  ;;  %v1065_v19 = vadd.f32 %v1051_v13, %v988_v42 }
 0x109   : > { %v1319_v14 = vadd.f32 %v1303_v4, %v1242_v45 }
 0x10b   : > { %v1331_v9 = vadd.f32 %v2048_v10, %v1319_v14 }
 0x10c   : > { %v1152_v20 = vpop.f32.mrf.mxu2 }
 0x10d   : > { %1339 = vst.msk [vmem:[%s2054_s15 + $0x20] sm:$0xff] %vm598_vm1, %v1331_v9  ;;  %v1166_v21 = vadd.f32 %v1152_v20, %v1065_v19  ;;  %v1229_v22 = vpop.f32.mrf.mxu3 }
 0x10e   : > { %v1054_v25 = vpop.f32.mrf.mxu1 }
 0x10f   : > { %v1243_v46 = vadd.f32 %v1229_v22, %v1166_v21  ;;  %v1066_v27 = vadd.f32 %v1054_v25, %v989_v49  ;;  %v1309_v52 = vpop.f32.mrf.mxu0 }
 0x111   : > { %v1320_v26 = vadd.f32 %v1306_v18, %v1243_v46 }
 0x113   : > { %v1332_v28 = vadd.f32 %v2048_v10, %v1320_v26 }
 0x114   : > { %v1155_v29 = vpop.f32.mrf.mxu2 }
 0x115   : > { %1340 = vst.msk [vmem:[%s2054_s15 + $0x28] sm:$0xff] %vm598_vm1, %v1332_v28  ;;  %v1167_v31 = vadd.f32 %v1155_v29, %v1066_v27  ;;  %v1232_v32 = vpop.f32.mrf.mxu3 }
 0x116   : > { %v1057_v53 = vpop.f32.mrf.mxu1 }
 0x117   : > { %v1244_v24 = vadd.f32 %v1232_v32, %v1167_v31  ;;  %v1067_v57 = vadd.f32 %v1057_v53, %v990_v50  ;;  %v1312_v58 = vpop.f32.mrf.mxu0 }
 0x119   : > { %v1321_v33 = vadd.f32 %v1309_v52, %v1244_v24 }
 0x11b   : > { %v1333_v35 = vadd.f32 %v2048_v10, %v1321_v33 }
 0x11c   : > { %v1158_v54 = vpop.f32.mrf.mxu2 }
 0x11d   : > { %1341 = vst.msk [vmem:[%s2054_s15 + $0x30] sm:$0xff] %vm598_vm1, %v1333_v35  ;;  %v1168_v36 = vadd.f32 %v1158_v54, %v1067_v57  ;;  %v1235_v56 = vpop.f32.mrf.mxu3 }
 0x11f   : > { %v1245_v59 = vadd.f32 %v1235_v56, %v1168_v36 }
 0x121   : > { %v1322_v60 = vadd.f32 %v1312_v58, %v1245_v59 }
 0x123   : > { %v1334_v61 = vadd.f32 %v2048_v10, %v1322_v60 }
 0x125   : > { %1342 = vst.msk [vmem:[%s2054_s15 + $0x38] sm:$0xff] %vm598_vm1, %v1334_v61 }
 0x126 PF: > { %s18_s29 = sadd.s32 1, %s1720_s29   ;;  %s2118_s27 = smov %s1716_s28 }
 0x127   : > { %p15_p5 = scmp.ge.s32.totalorder %s18_s29, 4   ;;  %s2119_s28 = smov %s2121_s30 }
 0x129   :  { %17 = sbr.rel (!%p15_p5) target bundleno = 2 (0x2), region = 103 }

</bundles_post_ra>
